<compile_context>
chip_gen: v7x
topology: tpu7x:2x2x1
jax: 0.10.0
libtpu: 0.0.40
codegen_flags: <defaults>
</compile_context>

<pallas_src>
import jax
import jax.numpy as jnp
from jax.experimental import pallas as pl
from jax.experimental.pallas import tpu as pltpu

_LANE = 128           # lane width / output padding
_MXU = 256            # k-tile alignment (v6e/v7x MXU is 256x256; multiple of 128 -> v5e safe)
_N_ALIGN = 256        # pad N to this so aligned tiles always divide evenly
_VMEM_LIMIT = 48 * 1024 * 1024


def _round_up(x, m):
    return ((x + m - 1) // m) * m


def _sublane_align(dtype):
    # second-minor tile dim must be a multiple of 32B/itemsize: 8 (f32), 16 (bf16), 32 (int8/fp8)
    return max(8, 32 // jnp.dtype(dtype).itemsize)


def _pick_tile(n, pref, align):
    """Largest tile <= pref that divides n and is a multiple of `align`."""
    t = min(pref, n)
    t = (t // align) * align
    while t >= align:
        if n % t == 0:
            return t
        t -= align
    return n  # unreachable when n is a multiple of align (guaranteed by padding)


def _make_layer_kernel(activation, valid_out, apply_w, scale_out_by_d):
    """out_rowtile = [d*]? act( (A_norm @ V)_rowtile [@ W]? ), streamed over k tiles of A."""

    def body(a_ref, vsk_ref, vsi_ref, d_ref, w_ref, o_ref, acc_ref):
        k = pl.program_id(1)

        @pl.when(k == 0)
        def _init():
            acc_ref[...] = jnp.zeros_like(acc_ref)

        a_blk = a_ref[...]
        if jnp.dtype(a_blk.dtype).itemsize < 2:        # int8 / fp8 storage -> bf16 MXU operand
            a_blk = a_blk.astype(jnp.bfloat16)
        # Native narrow x narrow MXU pass, f32 accumulation (exact for 0/1 A).
        acc_ref[...] += jnp.dot(a_blk, vsk_ref[...],
                                preferred_element_type=jnp.float32)

        @pl.when(k == pl.num_programs(1) - 1)
        def _finalize():
            d = d_ref[...]                                          # (tm, 1) f32
            # A_norm @ V == d * (A @ (d*V) + d*V)  with Vs = d*V pre-scaled.
            prop = d * (acc_ref[...] + vsi_ref[...].astype(jnp.float32))
            if apply_w:
                z = jnp.dot(prop, w_ref[...], preferred_element_type=jnp.float32)
            else:
                z = prop
            if activation == "relu":
                out = jnp.maximum(z, 0.0)
            else:  # row-wise softmax over the first `valid_out` (unpadded) columns
                col = jax.lax.broadcasted_iota(jnp.int32, z.shape, 1)
                valid = col < valid_out
                zm = jnp.where(valid, z, -jnp.inf)
                m = jnp.max(zm, axis=1, keepdims=True)
                e = jnp.where(valid, jnp.exp(zm - m), 0.0)
                s = jnp.sum(e, axis=1, keepdims=True)
                out = e * pl.reciprocal(s, approx=True)
            if scale_out_by_d:
                out = d * out            # fuse the inter-layer d*H1 scaling
            o_ref[...] = out.astype(o_ref.dtype)

    if apply_w:
        def kernel(a_ref, vsk_ref, vsi_ref, d_ref, w_ref, o_ref, acc_ref):
            body(a_ref, vsk_ref, vsi_ref, d_ref, w_ref, o_ref, acc_ref)
    else:
        def kernel(a_ref, vsk_ref, vsi_ref, d_ref, o_ref, acc_ref):
            body(a_ref, vsk_ref, vsi_ref, d_ref, None, o_ref, acc_ref)
    return kernel


def _prop_layer(A, Vs, d_col, W, *, activation, valid_out, tm, tk,
                apply_w, scale_out_by_d, out_dtype, out_width):
    """One propagation layer over a (row-tile, k-tile) grid with a VMEM accumulator."""
    N = A.shape[0]
    F = Vs.shape[1]
    if not apply_w:
        assert out_width == F
    grid = (N // tm, N // tk)

    kernel = _make_layer_kernel(activation, valid_out, apply_w, scale_out_by_d)

    in_specs = [
        pl.BlockSpec((tm, tk), lambda i, k: (i, k)),      # A tile (dominant HBM stream)
        pl.BlockSpec((tk, F), lambda i, k: (k, 0)),       # Vs rows for column tile k
        pl.BlockSpec((tm, F), lambda i, k: (i, 0)),       # Vs rows for row tile i (self-loop)
        pl.BlockSpec((tm, 1), lambda i, k: (i, 0)),       # d for row tile i
    ]
    args = [A, Vs, Vs, d_col]
    if apply_w:
        in_specs.append(pl.BlockSpec((F, out_width), lambda i, k: (0, 0)))  # W resident
        args.append(W)

    flops = 2 * N * N * F + (2 * N * F * out_width if apply_w else 0)
    transcendentals = N * out_width if activation == "softmax" else 0
    bytes_accessed = (A.size * A.dtype.itemsize
                      + (grid[0] + 1) * Vs.size * Vs.dtype.itemsize
                      + N * 4
                      + (W.size * W.dtype.itemsize if apply_w else 0)
                      + N * out_width * jnp.dtype(out_dtype).itemsize)

    return pl.pallas_call(
        kernel,
        out_shape=jax.ShapeDtypeStruct((N, out_width), out_dtype),
        grid_spec=pltpu.PrefetchScalarGridSpec(
            num_scalar_prefetch=0,
            grid=grid,
            in_specs=in_specs,
            out_specs=pl.BlockSpec((tm, out_width), lambda i, k: (i, 0)),
            scratch_shapes=[pltpu.VMEM((tm, F), jnp.float32)],
        ),
        compiler_params=pltpu.CompilerParams(
            dimension_semantics=("parallel", "arbitrary"),
            vmem_limit_bytes=_VMEM_LIMIT,
        ),
        cost_estimate=pl.CostEstimate(
            flops=flops,
            transcendentals=transcendentals,
            bytes_accessed=bytes_accessed,
        ),
    )(*args)


def gcn_2layer(A, X, W1, W2, *, block_m=512, block_k=2048, a_dtype=jnp.bfloat16):
    """2-layer GCN forward (skip=False).  A_norm is never built; A streams tile-by-tile.

    a_dtype: storage dtype for the adjacency stream.  bf16 (default) is exact for a
    0/1 adjacency; int8 (v5e/v6e) or fp8 (v7x) quarter the dominant HBM traffic and
    are widened to bf16 on load inside the kernel.
    """
    A = jnp.asarray(A)
    X = jnp.asarray(X).astype(jnp.float32)
    W1 = jnp.asarray(W1).astype(jnp.float32)
    W2 = jnp.asarray(W2).astype(jnp.float32)

    N = A.shape[0]
    F_in = X.shape[1]
    H = W1.shape[1]
    F_out = W2.shape[1]

    # Narrow adjacency copy: the only O(N^2) array that ever leaves HBM.
    A_in = A.astype(jnp.float32) if a_dtype is None else A.astype(a_dtype)
    vs_dtype = jnp.float32 if A_in.dtype == jnp.float32 else jnp.bfloat16

    # Pad N so every aligned tile divides evenly (padded nodes are isolated: zero
    # rows/cols, degree 0 -> d = 1, zero features; sliced away at the end).
    N_pad = _round_up(max(N, _N_ALIGN), _N_ALIGN)
    if N_pad != N:
        A_in = jnp.pad(A_in, ((0, N_pad - N), (0, N_pad - N)))
        X = jnp.pad(X, ((0, N_pad - N), (0, 0)))

    # D^-1/2 with self-loop: ONE O(N^2) pass over the compact A copy, f32-accumulated.
    d = jax.lax.rsqrt(jnp.sum(A_in, axis=1, dtype=jnp.float32) + 1.0)
    d_col = d[:, None]                                         # (N_pad, 1) f32

    # Lane-pad weight output widths to 128: lane-dense output stores, full MXU RHS.
    # Zero padding is exact (relu(0)=0; padded softmax columns masked in-kernel).
    H_pad = _round_up(max(H, _LANE), _LANE)
    Fo_pad = _round_up(max(F_out, _LANE), _LANE)
    W1p = jnp.zeros((F_in, H_pad), jnp.float32).at[:, :H].set(W1)
    W2p = jnp.zeros((H_pad, Fo_pad), jnp.float32).at[:H, :F_out].set(W2)

    # Tile selection: dtype-aware sublane alignment for tm, MXU-aligned (256) tk,
    # and cap tm so the parallel row axis has >= 2 tiles (feeds both v7x TCs).
    m_align = max(_sublane_align(A_in.dtype), _sublane_align(vs_dtype))
    tm = _pick_tile(N_pad, max(block_m, m_align), m_align)
    while N_pad // tm < 2 and tm > m_align:
        tm = _pick_tile(N_pad, max(tm // 2, m_align), m_align)
    tk = _pick_tile(N_pad, max(block_k, _MXU), _MXU)

    # Layer 1 reordered as A_norm @ (X @ W1): a tiny wrapper matmul widens the
    # propagated features to a dense 128 lanes, so the kernel needs no W matmul.
    Vs1 = ((d_col * X) @ W1p).astype(vs_dtype)                 # = d * (X @ W1), (N_pad, H_pad)

    # Layer 1: emits Vs2 = d * relu(A_norm @ X @ W1) directly (scaling fused, bf16).
    Vs2 = _prop_layer(A_in, Vs1, d_col, None,
                      activation="relu", valid_out=H_pad,
                      tm=tm, tk=tk, apply_w=False, scale_out_by_d=True,
                      out_dtype=vs_dtype, out_width=H_pad)

    # Layer 2: out = softmax(A_norm @ H1 @ W2, dim=1) over the first F_out columns.
    Op = _prop_layer(A_in, Vs2, d_col, W2p,
                     activation="softmax", valid_out=F_out,
                     tm=tm, tk=tk, apply_w=True, scale_out_by_d=False,
                     out_dtype=jnp.float32, out_width=Fo_pad)
    return Op[:N, :F_out]
    # TODO(synk): skip=True branch (GraphConv with an extra W_skip applied to raw X)
    # is not exercised by the default module config; only skip=False is implemented.


def gcn_2layer_ref(A, X, W1, W2):
    """Pure-JAX reference mirroring the PyTorch forward."""
    N = A.shape[0]
    A_hat = A + jnp.eye(N, dtype=A.dtype)
    d_inv_sqrt = 1.0 / jnp.sqrt(jnp.sum(A_hat, axis=1))
    A_norm = A_hat * d_inv_sqrt[:, None] * d_inv_sqrt[None, :]
    H1 = jnp.maximum(A_norm @ X @ W1, 0.0)
    Z = A_norm @ H1 @ W2
    return jax.nn.softmax(Z, axis=1)


if __name__ == "__main__":
    key = jax.random.PRNGKey(0)
    k_a, k_x, k_w1, k_w2 = jax.random.split(key, 4)

    N, F_in, F_hid, F_out = 512, 8, 32, 4

    # Symmetric 0/1 adjacency (no self-loops; kernel folds them in).
    A_rand = jax.random.uniform(k_a, (N, N))
    A = (A_rand + A_rand.T > 1.6).astype(jnp.float32)
    A = A * (1.0 - jnp.eye(N, dtype=jnp.float32))

    X = jax.random.normal(k_x, (N, F_in), dtype=jnp.float32)

    # GraphConv.__init__: W ~ randn(in, out) * 0.01 (deterministic here).
    W1 = jax.random.normal(k_w1, (F_in, F_hid), dtype=jnp.float32) * 0.01
    W2 = jax.random.normal(k_w2, (F_hid, F_out), dtype=jnp.float32) * 0.01

    ref = gcn_2layer_ref(A, X, W1, W2)

    # Performance config (defaults): bf16 A stream, tm capped to 256 for 2 row tiles,
    # tk = 512 (full k extent at this N).
    out = gcn_2layer(A, X, W1, W2)
    jax.block_until_ready(out)
    assert out.shape == (N, F_out)
    assert jnp.allclose(out, ref, atol=2e-3, rtol=2e-3), float(
        jnp.max(jnp.abs(out - ref)))
    assert jnp.allclose(jnp.sum(out, axis=1), 1.0, atol=2e-3)

    # Smaller tiles: exercises the multi-step k-reduction (accumulator init /
    # accumulate / finalize) and a 4-wide parallel row axis.
    out2 = gcn_2layer(A, X, W1, W2, block_m=128, block_k=256)
    jax.block_until_ready(out2)
    assert jnp.allclose(out2, ref, atol=2e-3, rtol=2e-3), float(
        jnp.max(jnp.abs(out2 - ref)))

    print("KERNEL_OK")
</pallas_src>

<mosaic_0001>
module attributes {stable_mosaic.version = 11 : i64} {
  func.func @kernel(%arg0: i32, %arg1: i32, %arg2: memref<256x512xbf16, #tpu.memory_space<vmem>>, %arg3: memref<512x128xbf16, #tpu.memory_space<vmem>>, %arg4: memref<256x128xbf16, #tpu.memory_space<vmem>>, %arg5: memref<256x1xf32, #tpu.memory_space<vmem>>, %arg6: memref<256x128xbf16, #tpu.memory_space<vmem>>, %arg7: memref<256x128xf32, #tpu.memory_space<vmem>>) attributes {dimension_semantics = [#tpu.dimension_semantics<parallel>, #tpu.dimension_semantics<arbitrary>], iteration_bounds = array<i64: 2, 1>, scalar_prefetch = 0 : i64, scratch_operands = 1 : i64, tpu.core_type = #tpu.core_type<tc>, window_params = [{transform_indices = @transform_0, window_bounds = array<i64: 256, 512>}, {transform_indices = @transform_1, window_bounds = array<i64: 512, 128>}, {transform_indices = @transform_2, window_bounds = array<i64: 256, 128>}, {transform_indices = @transform_3, window_bounds = array<i64: 256, 1>}, {transform_indices = @transform_4, window_bounds = array<i64: 256, 128>}]} {
    %c0_i32 = arith.constant 0 : i32
    %0 = arith.cmpi eq, %arg1, %c0_i32 : i32
    %1 = arith.extui %0 : i1 to i32
    %c0_i32_0 = arith.constant 0 : i32
    %2 = arith.cmpi ne, %1, %c0_i32_0 : i32
    scf.if %2 {
      %cst_10 = arith.constant 0.000000e+00 : f32
      %12 = vector.broadcast %cst_10 : f32 to vector<256x128xf32>
      %c0_11 = arith.constant 0 : index
      %c0_12 = arith.constant 0 : index
      %13 = vector.load %arg7[%c0_11, %c0_12] : memref<256x128xf32, #tpu.memory_space<vmem>>, vector<256x128xf32>
      tpu.vector_store %arg7[%c0_11, %c0_12], %12 {strides = array<i32>} : memref<256x128xf32, #tpu.memory_space<vmem>>, vector<256x128xf32>,
    } else {
    }
    %c0 = arith.constant 0 : index
    %c0_1 = arith.constant 0 : index
    %3 = vector.load %arg2[%c0, %c0_1] : memref<256x512xbf16, #tpu.memory_space<vmem>>, vector<256x512xbf16>
    %c0_2 = arith.constant 0 : index
    %c0_3 = arith.constant 0 : index
    %4 = vector.load %arg7[%c0_2, %c0_3] : memref<256x128xf32, #tpu.memory_space<vmem>>, vector<256x128xf32>
    %c0_4 = arith.constant 0 : index
    %c0_5 = arith.constant 0 : index
    %5 = vector.load %arg3[%c0_4, %c0_5] : memref<512x128xbf16, #tpu.memory_space<vmem>>, vector<512x128xbf16>
    %cst = arith.constant dense<0.000000e+00> : vector<256x128xf32>
    %6 = tpu.matmul %3, %5, %cst {dimension_numbers = #tpu.dot_dimension_numbers<[1], [0], [0], [1], [0, 0, 1, 1], [], []>} : vector<256x512xbf16>, vector<512x128xbf16>, vector<256x128xf32> -> vector<256x128xf32>
    %7 = arith.addf %4, %6 : vector<256x128xf32>
    %c0_6 = arith.constant 0 : index
    %c0_7 = arith.constant 0 : index
    %8 = vector.load %arg7[%c0_6, %c0_7] : memref<256x128xf32, #tpu.memory_space<vmem>>, vector<256x128xf32>
    tpu.vector_store %arg7[%c0_6, %c0_7], %7 {strides = array<i32>} : memref<256x128xf32, #tpu.memory_space<vmem>>, vector<256x128xf32>,
    %c0_i32_8 = arith.constant 0 : i32
    %9 = arith.cmpi eq, %arg1, %c0_i32_8 : i32
    %10 = arith.extui %9 : i1 to i32
    %c0_i32_9 = arith.constant 0 : i32
    %11 = arith.cmpi ne, %10, %c0_i32_9 : i32
    scf.if %11 {
      %c0_10 = arith.constant 0 : index
      %c0_11 = arith.constant 0 : index
      %12 = vector.load %arg5[%c0_10, %c0_11] : memref<256x1xf32, #tpu.memory_space<vmem>>, vector<256x1xf32>
      %c0_12 = arith.constant 0 : index
      %c0_13 = arith.constant 0 : index
      %13 = vector.load %arg7[%c0_12, %c0_13] : memref<256x128xf32, #tpu.memory_space<vmem>>, vector<256x128xf32>
      %c0_14 = arith.constant 0 : index
      %c0_15 = arith.constant 0 : index
      %14 = vector.load %arg4[%c0_14, %c0_15] : memref<256x128xbf16, #tpu.memory_space<vmem>>, vector<256x128xbf16>
      %15 = arith.extf %14 : vector<256x128xbf16> to vector<256x128xf32>
      %16 = arith.addf %13, %15 : vector<256x128xf32>
      %17 = vector.broadcast %12 : vector<256x1xf32> to vector<256x128xf32>
      %18 = arith.mulf %17, %16 : vector<256x128xf32>
      %cst_16 = arith.constant 0.000000e+00 : f32
      %19 = vector.broadcast %cst_16 : f32 to vector<256x128xf32>
      %20 = arith.maximumf %18, %19 : vector<256x128xf32>
      %21 = vector.broadcast %12 : vector<256x1xf32> to vector<256x128xf32>
      %22 = arith.mulf %21, %20 : vector<256x128xf32>
      %23 = arith.truncf %22 : vector<256x128xf32> to vector<256x128xbf16>
      %c0_17 = arith.constant 0 : index
      %c0_18 = arith.constant 0 : index
      %24 = vector.load %arg6[%c0_17, %c0_18] : memref<256x128xbf16, #tpu.memory_space<vmem>>, vector<256x128xbf16>
      tpu.vector_store %arg6[%c0_17, %c0_18], %23 {strides = array<i32>} : memref<256x128xbf16, #tpu.memory_space<vmem>>, vector<256x128xbf16>,
    } else {
    }
    return
  }
  func.func @transform_0(%arg0: i32, %arg1: i32) -> (i32, i32) {
    %c0_i32 = arith.constant 0 : i32
    return %arg0, %arg1 : i32, i32
  }
  func.func @transform_1(%arg0: i32, %arg1: i32) -> (i32, i32) {
    %c0_i32 = arith.constant 0 : i32
    %c0_i32_0 = arith.constant 0 : i32
    return %arg1, %c0_i32 : i32, i32
  }
  func.func @transform_2(%arg0: i32, %arg1: i32) -> (i32, i32) {
    %c0_i32 = arith.constant 0 : i32
    %c0_i32_0 = arith.constant 0 : i32
    return %arg0, %c0_i32 : i32, i32
  }
  func.func @transform_3(%arg0: i32, %arg1: i32) -> (i32, i32) {
    %c0_i32 = arith.constant 0 : i32
    %c0_i32_0 = arith.constant 0 : i32
    return %arg0, %c0_i32 : i32, i32
  }
  func.func @transform_4(%arg0: i32, %arg1: i32) -> (i32, i32) {
    %c0_i32 = arith.constant 0 : i32
    %c0_i32_0 = arith.constant 0 : i32
    return %arg0, %c0_i32 : i32, i32
  }
}

</mosaic_0001>

<bundles_post_ra>
// kernel: tpu_custom_call.1
= control target key start
LH: loop header
LB: loop body
LE: loop exit
PB: predicated region body
PF: predicated region fallthrough
CT: control target
= control target key end

     0   :  { %9 = vsyncpa [#allocation4], 0  ;;  %s3458_s0 = inlined_call_operand.hbm [shape: bf16[512,512], index: 0, kind: input, shape index: {}]   ;;  %s3459_s1 = inlined_call_operand.vmem [shape: bf16[512,128], index: 1, kind: input, shape index: {}]   ;;  %s3460_s2 = inlined_call_operand.vmem [shape: bf16[512,128], index: 2, kind: input, shape index: {}]   ;;  %s3461_s3 = inlined_call_operand.vmem [shape: f32[512,1], index: 3, kind: input, shape index: {}]   ;;  %s3462_s4 = inlined_call_operand.hbm [shape: bf16[512,128], index: 4, kind: output, shape index: {}]  }
   0x1   :  { %11 = vsyncpa [#allocation4 + $0x1], 0 }
   0x2   :  { %12 = vsyncpa [#allocation5], 0 }
   0x3   :  { %14 = vsyncpa [#allocation5 + $0x1], 0  ;;  %s3038_s15 = smov 0   ;;  %s3040_s16 = smov 0  }
   0x4   :  { %s3042_s17 = smov 0   ;;  %s3044_s18 = smov 0  }
   0x5   :  { %s3046_s19 = smov 0   ;;  %s3048_s20 = smov 0  }
   0x6 LB: > { %s2113_s21 = sadd.s32 4294967295, %s3004_s20   ;;  %s2114_s22 = sadd.s32 4294967294, %s3004_s20   ;;  %s3004_s20 = sphi %s3048_s20, %s20_s20   ;;  %s3000_s19 = sphi %s3046_s19, %s3477_s19   ;;  %s2996_s18 = sphi %s3044_s18, %s3476_s18   ;;  %s2992_s17 = sphi %s3042_s17, %s3475_s17   ;;  %s2988_s16 = sphi %s3040_s16, %s3474_s16   ;;  %s2984_s15 = sphi %s3038_s15, %s3473_s15  }
   0x7   : > { %s32_s23 = sadd.s32 1, %s3000_s19  ;;  %s41_s24 = sadd.s32 1, %s2992_s17 }
   0x8   : > { %p34_p0 = scmp.ge.s32.totalorder %s32_s23, 2  ;;  %p48_p1 = scmp.ne.s32.totalorder %s2992_s17, %s2988_s16 }
   0x9   : > { %p49_p2 = scmp.eq.s32.totalorder %s3004_s20, 0  ;;  %p54_p3 = scmp.ne.s32.totalorder %s2988_s16, %s2984_s15 }
   0xa   : > { %s3479_s23 = smov (%p34_p0, %s32_s23), 0  ;;  %p55_p5 = scmp.eq.s32.totalorder %s2113_s21, 0 }
   0xb   : > { %p3079_p4 = por %p49_p2, %p48_p1  ;;  %s36_s26 = ssub.s32 %s3000_s19, %s3479_s23 }
   0xc   : > { %p156_p6 = scmp.eq.s32.totalorder %s2113_s21, 1  ;;  %p39_p7 = scmp.eq.s32.totalorder %s36_s26, 0 }
   0xd   : > { %p3085_p8 = por %p55_p5, %p54_p3  ;;  %p162_p10 = scmp.eq.s32.totalorder %s2114_s22, 1 }
   0xe   : > { %p3089_p9 = por %p156_p6, %p48_p1  ;;  %p2707_p13 = scmp.lt.s32.totalorder %s3004_s20, 2 }
   0xf   : > { %s3094_s29 = scalar_select %p39_p7, %s2992_s17, %s41_s24  }
  0x10   : > { %s3466_s28 = scalar_select %p3089_p9, 1, 0 }
  0x11   : > { %p3096_p11 = por %p162_p10, %p54_p3  ;;  %s191_s5 = sand.u32 1, %s2992_s17  }
  0x12   : > { %s2118_s6 = sshll.u32 %s191_s5, 9  ;;  %s2263_s7 = sshll.u32 %s3000_s19, 13 }
  0x13   : > { %s3467_s30 = scalar_select %p3096_p11, 1, 0 }
  0x14   : > { %s3107_s10 = scalar_lea.hbm %s3458_s0, %s2263_s7  ;;  %s195_s11 = scalar_lea.vmem [#allocation3], %s2118_s6 }
  0x15   : > { %s205_s12 = sshll.u32 %s195_s11, 4  ;;  %p3113_p0 = pnand %p2707_p13, %p3079_p4  ;;  %s3109_s12 = int_to_ptr.vmem [resolvable:$true] %s205_s12 }
  0x16   : > { %s3118_s14 = scalar_lea.sflag [#allocation4], %s191_s5  ;;  %s2892_s21 = scalar_lea.hbm %s3107_s10, 8192 }
  0x17   : > { %p2893_p2 = scmp.ne.s32.totalorder %s3107_s10, %s2892_s21  ;;  %p2894_p3 = pneg %p3113_p0 }
  0x18   : > { %s2897_s25 = scalar_lea.hbm %s3458_s0, 16384  ;;  %p2898_p4 = scmp.lt.u32.totalorder %s3107_s10, %s3458_s0 }
  0x19   : > { %p2895_p5 = pnand %p2894_p3, %p2893_p2  ;;  %p2899_p7 = scmp.lt.u32.totalorder %s2897_s25, %s2892_s21 }
  0x1a   : > { %p2901_p13 = scmp.lt.u32.totalorder %s2892_s21, %s3107_s10 }
  0x1b   : > { %p2896_p6 = pneg %p2895_p5  ;;  %p2900_p10 = por %p2899_p7, %p2898_p4 }
  0x1d   : > { %p2902_p12 = por %p2901_p13, %p2900_p10 }
  0x1f   : > { %p2903_p1 = pnand %p2902_p12, %p2896_p6 }
  0x21   : > { %2906 = shalt.err (!%p2903_p1)
}
  0x22   : > { %s2907_s5 = scalar_lea.vmem %s3109_s12, 8192  ;;  %s3006_s7 = smov [#allocation3]  }
  0x23   : > { %p2908_p2 = scmp.ne.s32.totalorder %s3109_s12, %s2907_s5  ;;  %s2912_s8 = sshll.u32 %s3006_s7, 4  ;;  %s2913_s8 = int_to_ptr.vmem [resolvable:$false] %s2912_s8 }
  0x24   : > { %s2914_s9 = scalar_lea.vmem %s2913_s8, 16384  ;;  %p2915_p9 = scmp.lt.s32.totalorder %s3109_s12, %s2913_s8 }
  0x25   : > { %p2910_p5 = pnand %p2908_p2, %p2894_p3  ;;  %p2916_p4 = scmp.lt.s32.totalorder %s2914_s9, %s2907_s5 }
  0x27   : > { %p2911_p11 = pneg %p2910_p5  ;;  %p2917_p7 = por %p2916_p4, %p2915_p9 }
  0x29   : > { %p2918_p10 = pnand %p2917_p7, %p2911_p11 }
  0x2b   : > { %2921 = shalt.err (!%p2918_p10)
}
  0x2c   : > { %s3007_s11 = smov 256   ;;  %s3008_s21 = smov 16  }
  0x2d   : > { %2702 = dma.hbm_to_vmem [thread:$0]  (!%p3113_p0), %s3107_s10, 8192, %s3109_s12, %s3118_s14, %s3007_s11, %s3007_s11, %s3008_s21  }
  0x2e   : > { %p231_p12 = scmp.lt.s32.totalorder %s3004_s20, 3  ;;  %p3469_p1 = scmp.ge.s32.totalorder %s3004_s20, 1 }
  0x30   : > { %p232_p3 = pnand %p3469_p1, %p231_p12 }
  0x31   : > { %s3150_s22 = sand.u32 (!%p232_p3), 1, %s2988_s16  }
  0x32   : > { %235 = sbr.rel (%p232_p3) target bundleno = 457 (0x1c9), region = 36  ;;  %s2123_s24 = sshll.u32 (!%p232_p3), %s3150_s22, 9 }
  0x33   : > { %s238_s25 = scalar_lea.sflag (!%p232_p3), [#allocation4], %s3150_s22  ;;  %s3154_s26 = scalar_lea.vmem (!%p232_p3), [#allocation3], %s2123_s24 }
  0x39   : > { %2975 = dma.done.wait (%p3085_p8), %s238_s25, 8192  }
  0x3a   : > { %2977 = vsyncadd (%p3085_p8), %s238_s25, 4294959104  ;;  %v3009_v0 = vmov 0   ;;  %v2764_v1 = vld [vmem:[%s3459_s1 + $0x40] sm:$0xff]   ;;  %v2768_v5 = vld [vmem:[%s3459_s1 + $0x48] sm:$0xff]   ;;  %s2125_s8 = sshll.u32 %s2996_s18, 5  ;;  %s2296_s6 = sshll.u32 %s2996_s18, 11 }
  0x3b   : > { %2762 = vset.pattern.permute.xlu0 %v3009_v0  ;;  %2763 = vset.pattern.permute.xlu1 %v3009_v0  ;;  %v2765_v2 = vld [vmem:[%s3459_s1 + $0xc0] sm:$0xff]   ;;  %v2769_v6 = vld [vmem:[%s3459_s1 + $0xc8] sm:$0xff]   ;;  %v2772_v9 = vld [vmem:[%s3459_s1 + $0x50] sm:$0xff]   ;;  %p290_p8 = scmp.lt.s32.totalorder %s2125_s8, 63  ;;  %p3470_p11 = scmp.ne.s32.totalorder %s3466_s28, 0 }
  0x3c   : > { %2471 = vmatprep.subr.bf16.mxu0 %v2764_v1  ;;  %v2766_v3 = vld [vmem:[%s3459_s1] sm:$0xff]   ;;  %2583 = vmatprep.subr.bf16.mxu1 %v2765_v2  ;;  %v2770_v7 = vld [vmem:[%s3459_s1 + $0x8] sm:$0xff]   ;;  %v2773_v10 = vld [vmem:[%s3459_s1 + $0xd0] sm:$0xff]   ;;  %s3010_s18 = smov [#allocation6]  }
  0x3d   : > { %v2767_v4 = vld [vmem:[%s3459_s1 + $0x80] sm:$0xff]   ;;  %2472 = vmatpush3.bf16.msra.mxu0 %v2766_v3  ;;  %v2771_v8 = vld [vmem:[%s3459_s1 + $0x88] sm:$0xff]   ;;  %v2774_v11 = vld [vmem:[%s3459_s1 + $0x10] sm:$0xff]   ;;  %s3481_s8 = smov (!%p290_p8, %s2125_s8), 63  ;;  %s2926_s21 = sshll.u32 %s3010_s18, 4  ;;  %s2927_s21 = int_to_ptr.vmem [resolvable:$false] %s2926_s21 }
  0x3e   : > { %2584 = vmatpush3.bf16.msra.mxu1 %v2767_v4  ;;  %2473 = vmatprep.subr.bf16.mxu0 %v2768_v5  ;;  %v2775_v12 = vld [vmem:[%s3459_s1 + $0x90] sm:$0xff]   ;;  %v2776_v13 = vld [vmem:[%s3459_s1 + $0x58] sm:$0xff]   ;;  %v2780_v17 = vld [vmem:[%s3459_s1 + $0x60] sm:$0xff]   ;;  %s2128_s9 = sshll.u32 %s3481_s8, 3  ;;  %s2126_s25 = sshll.u32 %s3481_s8, 2 }
  0x3f   : > { %2585 = vmatprep.subr.bf16.mxu1 %v2769_v6  ;;  %v2777_v14 = vld [vmem:[%s3459_s1 + $0xd8] sm:$0xff]   ;;  %v2781_v18 = vld [vmem:[%s3459_s1 + $0xe0] sm:$0xff]   ;;  %v2784_v21 = vld [vmem:[%s3459_s1 + $0x68] sm:$0xff]   ;;  %s3281_s24 = scalar_lea.vmem %s3461_s3, %s2128_s9  ;;  %s3365_s13 = scalar_lea.vmem %s3460_s2, %s2126_s25 }
  0x40   : > { %v2778_v15 = vld [vmem:[%s3459_s1 + $0x18] sm:$0xff]   ;;  %v2782_v19 = vld [vmem:[%s3459_s1 + $0x20] sm:$0xff]   ;;  %v2785_v22 = vld [vmem:[%s3459_s1 + $0xe8] sm:$0xff]   ;;  %s3406_s8 = scalar_lea.hbm %s3462_s4, %s2296_s6  ;;  %s1977_s9 = scalar_lea.sflag [#allocation5], %s3150_s22 }
  0x41   : > { %2474 = vmatpush3.bf16.msra.mxu0 %v2770_v7  ;;  %v2779_v16 = vld [vmem:[%s3459_s1 + $0x98] sm:$0xff]   ;;  %v2783_v20 = vld [vmem:[%s3459_s1 + $0xa0] sm:$0xff]   ;;  %v2786_v23 = vld [vmem:[%s3459_s1 + $0x28] sm:$0xff]  }
  0x42   : > { %2586 = vmatpush3.bf16.msra.mxu1 %v2771_v8  ;;  %2475 = vmatprep.subr.bf16.mxu0 %v2772_v9  ;;  %v2787_v24 = vld [vmem:[%s3459_s1 + $0xa8] sm:$0xff]   ;;  %v2788_v25 = vld [vmem:[%s3459_s1 + $0x70] sm:$0xff]   ;;  %v2792_v29 = vld [vmem:[%s3459_s1 + $0x78] sm:$0xff]  }
  0x43   : > { %2587 = vmatprep.subr.bf16.mxu1 %v2773_v10  ;;  %v2789_v26 = vld [vmem:[%s3459_s1 + $0xf0] sm:$0xff]   ;;  %v2793_v30 = vld [vmem:[%s3459_s1 + $0xf8] sm:$0xff]   ;;  %v1400_v53 = vld [vmem:[%s3281_s24] sm:$0xff] }
  0x44   : > { %v2790_v27 = vld [vmem:[%s3459_s1 + $0x30] sm:$0xff]   ;;  %v2794_v31 = vld [vmem:[%s3459_s1 + $0x38] sm:$0xff]   ;;  %1562 = vperm.xlu0 %2762, %v1400_v53   ;;  %v1401_v57 = vld [vmem:[%s3281_s24 + $0x8] sm:$0xff] }
  0x45   : > { %2476 = vmatpush3.bf16.msra.mxu0 %v2774_v11  ;;  %v2791_v28 = vld [vmem:[%s3459_s1 + $0xb0] sm:$0xff]   ;;  %v2795_v32 = vld [vmem:[%s3459_s1 + $0xb8] sm:$0xff]   ;;  %v1404_v60 = vld [vmem:[%s3281_s24 + $0x20] sm:$0xff] }
  0x46   : > { %2588 = vmatpush3.bf16.msra.mxu1 %v2775_v12  ;;  %2477 = vmatprep.subr.bf16.mxu0 %v2776_v13  ;;  %v2796_v33 = vld [vmem:[%s3154_s26] ss:$16 sps:$4 sm:$0xff]   ;;  %v2798_v34 = vld [vmem:[%s3154_s26 + $0x4] ss:$16 sps:$4 sm:$0xff]   ;;  %v2799_v35 = vld [vmem:[%s3154_s26 + $0x8] ss:$16 sps:$4 sm:$0xff]  }
  0x47   : > { %2589 = vmatprep.subr.bf16.mxu1 %v2777_v14  ;;  %v2801_v36 = vld [vmem:[%s3154_s26 + $0xc] ss:$16 sps:$4 sm:$0xff]   ;;  %1043 = vmatprep.mubr.bf16.mxu0 %v2798_v34  ;;  %v2802_v37 = vld [vmem:[%s3154_s26 + $0x24] ss:$16 sps:$4 sm:$0xff]   ;;  %v2806_v39 = vld [vmem:[%s3154_s26 + $0x20] ss:$16 sps:$4 sm:$0xff]  }
  0x48   : > { %1204 = vmatprep.mubr.bf16.mxu1 %v2801_v36  ;;  %v2804_v38 = vld [vmem:[%s3154_s26 + $0x2c] ss:$16 sps:$4 sm:$0xff]   ;;  %v2807_v40 = vld [vmem:[%s3154_s26 + $0x28] ss:$16 sps:$4 sm:$0xff]   ;;  %v2808_v41 = vld [vmem:[%s3154_s26 + $0x44] ss:$16 sps:$4 sm:$0xff]   ;;  %1567 = vperm.xlu0 %2762, %v1401_v57  }
  0x49   : > { %2478 = vmatpush3.bf16.msra.mxu0 %v2778_v15  ;;  %v2810_v42 = vld [vmem:[%s3154_s26 + $0x4c] ss:$16 sps:$4 sm:$0xff]   ;;  %v2812_v43 = vld [vmem:[%s3154_s26 + $0x40] ss:$16 sps:$4 sm:$0xff]   ;;  %v2813_v44 = vld [vmem:[%s3154_s26 + $0x48] ss:$16 sps:$4 sm:$0xff]  }
  0x4a   : > { %2590 = vmatpush3.bf16.msra.mxu1 %v2779_v16  ;;  %2479 = vmatprep.subr.bf16.mxu0 %v2780_v17  ;;  %v2814_v45 = vld [vmem:[%s3154_s26 + $0x64] ss:$16 sps:$4 sm:$0xff]   ;;  %v2816_v46 = vld [vmem:[%s3154_s26 + $0x6c] ss:$16 sps:$4 sm:$0xff]   ;;  %v2818_v47 = vld [vmem:[%s3154_s26 + $0x60] ss:$16 sps:$4 sm:$0xff]  }
  0x4b   : > { %2591 = vmatprep.subr.bf16.mxu1 %v2781_v18  ;;  %v2819_v48 = vld [vmem:[%s3154_s26 + $0x68] ss:$16 sps:$4 sm:$0xff]   ;;  %v2820_v49 = vld [vmem:[%s3154_s26 + $0x84] ss:$16 sps:$4 sm:$0xff]   ;;  %v2822_v50 = vld [vmem:[%s3154_s26 + $0x8c] ss:$16 sps:$4 sm:$0xff]  }
  0x4c   : > { %v2824_v51 = vld [vmem:[%s3154_s26 + $0x80] ss:$16 sps:$4 sm:$0xff]   ;;  %v2825_v52 = vld [vmem:[%s3154_s26 + $0x88] ss:$16 sps:$4 sm:$0xff]   ;;  %v2826_v55 = vld [vmem:[%s3154_s26 + $0xa4] ss:$16 sps:$4 sm:$0xff]   ;;  %1582 = vperm.xlu0 %2762, %v1404_v60  }
  0x4d   : > { %2480 = vmatpush3.bf16.msra.mxu0 %v2782_v19  ;;  %v1402_v54 = vld [vmem:[%s3281_s24 + $0x10] sm:$0xff]  ;;  %v2828_v56 = vld [vmem:[%s3154_s26 + $0xac] ss:$16 sps:$4 sm:$0xff]   ;;  %v2831_v61 = vld [vmem:[%s3154_s26 + $0xa8] ss:$16 sps:$4 sm:$0xff]  }
  0x4e   : > { %2592 = vmatpush3.bf16.msra.mxu1 %v2783_v20  ;;  %2481 = vmatprep.subr.bf16.mxu0 %v2784_v21  ;;  %v1403_v58 = vld [vmem:[%s3281_s24 + $0x18] sm:$0xff]  ;;  %v2830_v59 = vld [vmem:[%s3154_s26 + $0xa0] ss:$16 sps:$4 sm:$0xff]   ;;  %v1405_v62 = vld [vmem:[%s3281_s24 + $0x28] sm:$0xff] }
  0x4f   : > { %2593 = vmatprep.subr.bf16.mxu1 %v2785_v22  ;;  %1572 = vperm.xlu1 %2763, %v1402_v54   ;;  %v2832_v63 = vld [vmem:[%s3154_s26 + $0xc4] ss:$16 sps:$4 sm:$0xff]   ;;  %v2834_v0 = vld [vmem:[%s3154_s26 + $0xcc] ss:$16 sps:$4 sm:$0xff]   ;;  %v2836_v4 = vld [vmem:[%s3154_s26 + $0xc0] ss:$16 sps:$4 sm:$0xff]  }
  0x50   : > { %v1406_v1 = vld [vmem:[%s3281_s24 + $0x30] sm:$0xff]  ;;  %v1407_v2 = vld [vmem:[%s3281_s24 + $0x38] sm:$0xff]  ;;  %v1408_v3 = vld [vmem:[%s3281_s24 + $0x40] sm:$0xff] }
  0x51   : > { %2482 = vmatpush3.bf16.msra.mxu0 %v2786_v23  ;;  %1592 = vperm.xlu0 %2762, %v1406_v1   ;;  %v1409_v5 = vld [vmem:[%s3281_s24 + $0x48] sm:$0xff]  ;;  %v2838_v7 = vld [vmem:[%s3154_s26 + $0xe4] ss:$16 sps:$4 sm:$0xff]   ;;  %v1411_v10 = vld [vmem:[%s3281_s24 + $0x58] sm:$0xff] }
  0x52   : > { %2594 = vmatpush3.bf16.msra.mxu1 %v2787_v24  ;;  %2483 = vmatprep.subr.bf16.mxu0 %v2788_v25  ;;  %v2837_v6 = vld [vmem:[%s3154_s26 + $0xc8] ss:$16 sps:$4 sm:$0xff]   ;;  %v2840_v8 = vld [vmem:[%s3154_s26 + $0xec] ss:$16 sps:$4 sm:$0xff]   ;;  %v1410_v9 = vld [vmem:[%s3281_s24 + $0x50] sm:$0xff] }
  0x53   : > { %2595 = vmatprep.subr.bf16.mxu1 %v2789_v26  ;;  %1577 = vperm.xlu1 %2763, %v1403_v58   ;;  %v1412_v11 = vld [vmem:[%s3281_s24 + $0x60] sm:$0xff]  ;;  %v1413_v13 = vld [vmem:[%s3281_s24 + $0x68] sm:$0xff]  ;;  %v1414_v17 = vld [vmem:[%s3281_s24 + $0x70] sm:$0xff] }
  0x54   : > { %v2842_v12 = vld [vmem:[%s3154_s26 + $0xe0] ss:$16 sps:$4 sm:$0xff]   ;;  %v2843_v14 = vld [vmem:[%s3154_s26 + $0xe8] ss:$16 sps:$4 sm:$0xff]   ;;  %v2844_v15 = vld [vmem:[%s3154_s26 + $0x104] ss:$16 sps:$4 sm:$0xff]  }
  0x55   : > { %2484 = vmatpush3.bf16.msra.mxu0 %v2790_v27  ;;  %1602 = vperm.xlu0 %2762, %v1408_v3   ;;  %v2846_v16 = vld [vmem:[%s3154_s26 + $0x10c] ss:$16 sps:$4 sm:$0xff]   ;;  %v1416_v19 = vld [vmem:[%s3281_s24 + $0x80] sm:$0xff]  ;;  %v2849_v22 = vld [vmem:[%s3154_s26 + $0x108] ss:$16 sps:$4 sm:$0xff]  }
  0x56   : > { %2596 = vmatpush3.bf16.msra.mxu1 %v2791_v28  ;;  %2485 = vmatprep.subr.bf16.mxu0 %v2792_v29  ;;  %v1415_v18 = vld [vmem:[%s3281_s24 + $0x78] sm:$0xff]  ;;  %v2848_v20 = vld [vmem:[%s3154_s26 + $0x100] ss:$16 sps:$4 sm:$0xff]   ;;  %v1417_v21 = vld [vmem:[%s3281_s24 + $0x88] sm:$0xff] }
  0x57   : > { %2597 = vmatprep.subr.bf16.mxu1 %v2793_v30  ;;  %1587 = vperm.xlu1 %2763, %v1405_v62   ;;  %v2850_v23 = vld [vmem:[%s3154_s26 + $0x124] ss:$16 sps:$4 sm:$0xff]   ;;  %v2852_v24 = vld [vmem:[%s3154_s26 + $0x12c] ss:$16 sps:$4 sm:$0xff]   ;;  %v2854_v28 = vld [vmem:[%s3154_s26 + $0x120] ss:$16 sps:$4 sm:$0xff]  }
  0x58   : > { %v1418_v25 = vld [vmem:[%s3281_s24 + $0x90] sm:$0xff]  ;;  %v1419_v26 = vld [vmem:[%s3281_s24 + $0x98] sm:$0xff]  ;;  %v1420_v27 = vld [vmem:[%s3281_s24 + $0xa0] sm:$0xff] }
  0x59   : > { %2486 = vmatpush3.bf16.msra.mxu0 %v2794_v31  ;;  %1612 = vperm.xlu0 %2762, %v1410_v9   ;;  %v1421_v29 = vld [vmem:[%s3281_s24 + $0xa8] sm:$0xff]  ;;  %v2856_v31 = vld [vmem:[%s3154_s26 + $0x144] ss:$16 sps:$4 sm:$0xff]   ;;  %v1423_v34 = vld [vmem:[%s3281_s24 + $0xb8] sm:$0xff] }
  0x5a   : > { %2598 = vmatpush3.bf16.msra.mxu1 %v2795_v32  ;;  %v2855_v30 = vld [vmem:[%s3154_s26 + $0x128] ss:$16 sps:$4 sm:$0xff]   ;;  %v2858_v32 = vld [vmem:[%s3154_s26 + $0x14c] ss:$16 sps:$4 sm:$0xff]   ;;  %v2860_v36 = vld [vmem:[%s3154_s26 + $0x140] ss:$16 sps:$4 sm:$0xff]  }
  0x5b   : > { %1597 = vperm.xlu1 %2763, %v1407_v2   ;;  %v2874_v53 = vld [vmem:[%s3154_s26 + $0x1a4] ss:$16 sps:$4 sm:$0xff]   ;;  %v2876_v54 = vld [vmem:[%s3154_s26 + $0x1ac] ss:$16 sps:$4 sm:$0xff]   ;;  %v2885_v60 = vld [vmem:[%s3154_s26 + $0x1c8] ss:$16 sps:$4 sm:$0xff]  }
  0x5c   : > { %1044 = vmatmul.mubr.bf16.vlgmr.msra.gmra.mrb[0].mxu0 %v2796_v33  ;;  %v1422_v33 = vld [vmem:[%s3281_s24 + $0xb0] sm:$0xff]  ;;  %v2882_v58 = vld [vmem:[%s3154_s26 + $0x1cc] ss:$16 sps:$4 sm:$0xff]   ;;  %v2298_v2 = vld [vmem:[%s3365_s13] sm:$0xff]  }
  0x5d   : > { %1205 = vmatmul.mubr.bf16.vlgmr.msra.gmra.mrb[0].mxu1 %v2799_v35  ;;  %1051 = vmatprep.mubr.bf16.mxu0 %v2802_v37  ;;  %v1424_v35 = vld [vmem:[%s3281_s24 + $0xc0] sm:$0xff]  ;;  %v1425_v37 = vld [vmem:[%s3281_s24 + $0xc8] sm:$0xff] }
  0x5e   : > { %1212 = vmatprep.mubr.bf16.mxu1 %v2804_v38  ;;  %1622 = vperm.xlu0 %2762, %v1412_v11   ;;  %v2861_v38 = vld [vmem:[%s3154_s26 + $0x148] ss:$16 sps:$4 sm:$0xff]   ;;  %v2880_v57 = vld [vmem:[%s3154_s26 + $0x1c4] ss:$16 sps:$4 sm:$0xff]   ;;  %v2888_v62 = vld [vmem:[%s3154_s26 + $0x1ec] ss:$16 sps:$4 sm:$0xff]  }
  0x5f   : > { %1607 = vperm.xlu1 %2763, %v1409_v5  }
  0x62   : > { %1632 = vperm.xlu0 %2762, %v1414_v17   ;;  %v2300_v17 = vunpack.c.h.bf16 %v2298_v2 }
  0x63   : > { %1617 = vperm.xlu1 %2763, %v1411_v10  }
  0x64   : > { %1052 = vmatmul.mubr.bf16.gmra.mrb[4].mxu0 %v2806_v39  ;;  %v2862_v39 = vld [vmem:[%s3154_s26 + $0x164] ss:$16 sps:$4 sm:$0xff]  }
  0x65   : > { %1213 = vmatmul.mubr.bf16.gmra.mrb[4].mxu1 %v2807_v40  ;;  %1059 = vmatprep.mubr.bf16.mxu0 %v2808_v41  ;;  %v2864_v40 = vld [vmem:[%s3154_s26 + $0x16c] ss:$16 sps:$4 sm:$0xff]   ;;  %v1426_v41 = vld [vmem:[%s3281_s24 + $0xd0] sm:$0xff] }
  0x66   : > { %1220 = vmatprep.mubr.bf16.mxu1 %v2810_v42  ;;  %1642 = vperm.xlu0 %2762, %v1416_v19   ;;  %v1427_v42 = vld [vmem:[%s3281_s24 + $0xd8] sm:$0xff] }
  0x67   : > { %1627 = vperm.xlu1 %2763, %v1413_v13  }
  0x6a   : > { %1652 = vperm.xlu0 %2762, %v1418_v25  }
  0x6b   : > { %1637 = vperm.xlu1 %2763, %v1415_v18  }
  0x6c   : > { %1060 = vmatmul.mubr.bf16.gmra.mrb[8].mxu0 %v2812_v43  ;;  %v1428_v43 = vld [vmem:[%s3281_s24 + $0xe0] sm:$0xff] }
  0x6d   : > { %1221 = vmatmul.mubr.bf16.gmra.mrb[8].mxu1 %v2813_v44  ;;  %1067 = vmatprep.mubr.bf16.mxu0 %v2814_v45  ;;  %v2866_v44 = vld [vmem:[%s3154_s26 + $0x160] ss:$16 sps:$4 sm:$0xff]   ;;  %v1429_v45 = vld [vmem:[%s3281_s24 + $0xe8] sm:$0xff] }
  0x6e   : > { %1228 = vmatprep.mubr.bf16.mxu1 %v2816_v46  ;;  %1662 = vperm.xlu0 %2762, %v1420_v27   ;;  %v2867_v46 = vld [vmem:[%s3154_s26 + $0x168] ss:$16 sps:$4 sm:$0xff]  }
  0x6f   : > { %1647 = vperm.xlu1 %2763, %v1417_v21  }
  0x72   : > { %1672 = vperm.xlu0 %2762, %v1422_v33  }
  0x73   : > { %1657 = vperm.xlu1 %2763, %v1419_v26  }
  0x74   : > { %1068 = vmatmul.mubr.bf16.gmra.mrb[12].mxu0 %v2818_v47  ;;  %v2868_v47 = vld [vmem:[%s3154_s26 + $0x184] ss:$16 sps:$4 sm:$0xff]  }
  0x75   : > { %1229 = vmatmul.mubr.bf16.gmra.mrb[12].mxu1 %v2819_v48  ;;  %1075 = vmatprep.mubr.bf16.mxu0 %v2820_v49  ;;  %v2870_v48 = vld [vmem:[%s3154_s26 + $0x18c] ss:$16 sps:$4 sm:$0xff]   ;;  %v1430_v49 = vld [vmem:[%s3281_s24 + $0xf0] sm:$0xff] }
  0x76   : > { %1236 = vmatprep.mubr.bf16.mxu1 %v2822_v50  ;;  %1682 = vperm.xlu0 %2762, %v1424_v35   ;;  %v1431_v50 = vld [vmem:[%s3281_s24 + $0xf8] sm:$0xff]  ;;  %s2928_s24 = scalar_lea.vmem %s2927_s21, 4096 }
  0x77   : > { %1667 = vperm.xlu1 %2763, %v1421_v29  }
  0x7a   : > { %1692 = vperm.xlu0 %2762, %v1426_v41  }
  0x7b   : > { %1677 = vperm.xlu1 %2763, %v1423_v34  }
  0x7c   : > { %1076 = vmatmul.mubr.bf16.gmra.mrb[16].mxu0 %v2824_v51  ;;  %v2872_v51 = vld [vmem:[%s3154_s26 + $0x180] ss:$16 sps:$4 sm:$0xff]  }
  0x7d   : > { %1237 = vmatmul.mubr.bf16.gmra.mrb[16].mxu1 %v2825_v52  ;;  %1083 = vmatprep.mubr.bf16.mxu0 %v2826_v55  ;;  %v2873_v52 = vld [vmem:[%s3154_s26 + $0x188] ss:$16 sps:$4 sm:$0xff]   ;;  %v2878_v55 = vld [vmem:[%s3154_s26 + $0x1a0] ss:$16 sps:$4 sm:$0xff]  }
  0x7e   : > { %1244 = vmatprep.mubr.bf16.mxu1 %v2828_v56  ;;  %1702 = vperm.xlu0 %2762, %v1428_v43   ;;  %v2879_v56 = vld [vmem:[%s3154_s26 + $0x1a8] ss:$16 sps:$4 sm:$0xff]  }
  0x7f   : > { %1687 = vperm.xlu1 %2763, %v1425_v37  }
  0x82   : > { %1712 = vperm.xlu0 %2762, %v1430_v49   ;;  %v2442_v49 = vld [vmem:[%s3365_s13 + $0x10] sm:$0xff]  }
  0x83   : > { %1697 = vperm.xlu1 %2763, %v1427_v42  }
  0x84   : > { %1084 = vmatmul.mubr.bf16.gmra.mrb[20].mxu0 %v2830_v59  ;;  %v2884_v59 = vld [vmem:[%s3154_s26 + $0x1c0] ss:$16 sps:$4 sm:$0xff]  }
  0x85   : > { %1245 = vmatmul.mubr.bf16.gmra.mrb[20].mxu1 %v2831_v61  ;;  %1091 = vmatprep.mubr.bf16.mxu0 %v2832_v63  ;;  %v2886_v61 = vld [vmem:[%s3154_s26 + $0x1e4] ss:$16 sps:$4 sm:$0xff]   ;;  %v2890_v63 = vld [vmem:[%s3154_s26 + $0x1e0] ss:$16 sps:$4 sm:$0xff]  }
  0x86   : > { %1252 = vmatprep.mubr.bf16.mxu1 %v2834_v0  ;;  %v2891_v0 = vld [vmem:[%s3154_s26 + $0x1e8] ss:$16 sps:$4 sm:$0xff]   ;;  %s2124_s26 = sshll.u32 %s3150_s22, 7 }
  0x87   : > { %1707 = vperm.xlu1 %2763, %v1429_v45   ;;  %s3371_s14 = scalar_lea.vmem [#allocation6], %s2124_s26 }
  0x88   : > { %s1990_s5 = sshll.u32 %s3371_s14, 4  ;;  %s3408_s5 = int_to_ptr.vmem [resolvable:$true] %s1990_s5 }
  0x89   : > { %s2922_s11 = scalar_lea.vmem %s3408_s5, 2048  ;;  %p2929_p13 = scmp.lt.s32.totalorder %s3408_s5, %s2927_s21 }
  0x8a   : > { %p2923_p9 = scmp.ne.s32.totalorder %s3408_s5, %s2922_s11  ;;  %p2930_p2 = scmp.lt.s32.totalorder %s2928_s24, %s2922_s11 }
  0x8b   : > { %1717 = vperm.xlu1 %2763, %v1431_v50  }
  0x8c   : > { %1092 = vmatmul.mubr.bf16.gmra.mrb[24].mxu0 %v2836_v4  ;;  %p2924_p0 = pnand %p2923_p9, %p3470_p11  ;;  %p2931_p5 = por %p2930_p2, %p2929_p13 }
  0x8d   : > { %1253 = vmatmul.mubr.bf16.gmra.mrb[24].mxu1 %v2837_v6  ;;  %1099 = vmatprep.mubr.bf16.mxu0 %v2838_v7 }
  0x8e   : > { %1260 = vmatprep.mubr.bf16.mxu1 %v2840_v8  ;;  %p2925_p6 = pneg %p2924_p0 }
  0x90   : > { %p2932_p4 = pnand %p2931_p5, %p2925_p6 }
  0x94   : > { %1100 = vmatmul.mubr.bf16.gmra.mrb[28].mxu0 %v2842_v12  ;;  %v2299_v12 = vunpack.c.l.bf16 %v2298_v2 }
  0x95   : > { %1261 = vmatmul.mubr.bf16.gmra.mrb[28].mxu1 %v2843_v14  ;;  %1107 = vmatprep.mubr.bf16.mxu0 %v2844_v15 }
  0x96   : > { %1268 = vmatprep.mubr.bf16.mxu1 %v2846_v16 }
  0x9c   : > { %1108 = vmatmul.mubr.bf16.gmra.mrb[32].mxu0 %v2848_v20 }
  0x9d   : > { %1269 = vmatmul.mubr.bf16.gmra.mrb[32].mxu1 %v2849_v22  ;;  %1115 = vmatprep.mubr.bf16.mxu0 %v2850_v23  ;;  %v2441_v23 = vld [vmem:[%s3365_s13 + $0x8] sm:$0xff]  }
  0x9e   : > { %1276 = vmatprep.mubr.bf16.mxu1 %v2852_v24  ;;  %v2303_v34 = vunpack.c.l.bf16 %v2441_v23  ;;  %v2304_v42 = vunpack.c.h.bf16 %v2441_v23 }
  0xa4   : > { %1116 = vmatmul.mubr.bf16.gmra.mrb[36].mxu0 %v2854_v28 }
  0xa5   : > { %1277 = vmatmul.mubr.bf16.gmra.mrb[36].mxu1 %v2855_v30  ;;  %1123 = vmatprep.mubr.bf16.mxu0 %v2856_v31 }
  0xa6   : > { %1284 = vmatprep.mubr.bf16.mxu1 %v2858_v32 }
  0xac   : > { %1124 = vmatmul.mubr.bf16.gmra.mrb[40].mxu0 %v2860_v36 }
  0xad   : > { %1285 = vmatmul.mubr.bf16.gmra.mrb[40].mxu1 %v2861_v38  ;;  %1131 = vmatprep.mubr.bf16.mxu0 %v2862_v39 }
  0xae   : > { %1292 = vmatprep.mubr.bf16.mxu1 %v2864_v40 }
  0xb4   : > { %1132 = vmatmul.mubr.bf16.gmra.mrb[44].mxu0 %v2866_v44 }
  0xb5   : > { %1293 = vmatmul.mubr.bf16.gmra.mrb[44].mxu1 %v2867_v46  ;;  %1139 = vmatprep.mubr.bf16.mxu0 %v2868_v47 }
  0xb6   : > { %1300 = vmatprep.mubr.bf16.mxu1 %v2870_v48 }
  0xbc   : > { %1140 = vmatmul.mubr.bf16.gmra.mrb[48].mxu0 %v2872_v51 }
  0xbd   : > { %1301 = vmatmul.mubr.bf16.gmra.mrb[48].mxu1 %v2873_v52  ;;  %1147 = vmatprep.mubr.bf16.mxu0 %v2874_v53 }
  0xbe   : > { %1308 = vmatprep.mubr.bf16.mxu1 %v2876_v54 }
  0xc3   : > { %v1563_v3 = vpop.permute.xlu0 %1562 }
  0xc4   : > { %1148 = vmatmul.mubr.bf16.gmra.mrb[52].mxu0 %v2878_v55 }
  0xc5   : > { %1309 = vmatmul.mubr.bf16.gmra.mrb[52].mxu1 %v2879_v56  ;;  %1155 = vmatprep.mubr.bf16.mxu0 %v2880_v57 }
  0xc6   : > { %1316 = vmatprep.mubr.bf16.mxu1 %v2882_v58 }
  0xc7   : > { %v1568_v22 = vpop.permute.xlu0 %1567 }
  0xcc   : > { %1156 = vmatmul.mubr.bf16.gmra.mrb[56].mxu0 %v2884_v59 }
  0xcd   : > { %1317 = vmatmul.mubr.bf16.gmra.mrb[56].mxu1 %v2885_v60  ;;  %1163 = vmatprep.mubr.bf16.mxu0 %v2886_v61  ;;  %v2307_v61 = vunpack.c.l.bf16 %v2442_v49 }
  0xce   : > { %1324 = vmatprep.mubr.bf16.mxu1 %v2888_v62  ;;  %v1573_v20 = vpop.permute.xlu1 %1572 }
  0xd2   : > { %v1578_v47 = vpop.permute.xlu1 %1577 }
  0xd4   : > { %1164 = vmatmul.mubr.bf16.gmra.mrb[60].mxu0 %v2890_v63 }
  0xd5   : > { %1325 = vmatmul.mubr.bf16.gmra.mrb[60].mxu1 %v2891_v0 }
 0x12f   : > { %v2487_v1 = vpop.f32.mrb[0].mxu0 }
 0x130   : > { %v2599_v4 = vpop.f32.mrb[0].mxu1  ;;  %v2488_v5 = vpop.f32.mrb[1].mxu0 }
 0x131   : > { %v2489_v6 = vadd.f32 %v2488_v5, %v2487_v1  ;;  %v2600_v7 = vpop.f32.mrb[1].mxu1  ;;  %v2490_v8 = vpop.f32.mrb[2].mxu0  ;;  %v2308_v5 = vunpack.c.h.bf16 %v2442_v49 }
 0x132   : > { %v2601_v9 = vadd.f32 %v2600_v7, %v2599_v4  ;;  %v2602_v10 = vpop.f32.mrb[2].mxu1  ;;  %v2491_v11 = vpop.f32.mrb[3].mxu0 }
 0x133   : > { %v2492_v13 = vadd.f32 %v2491_v11, %v2490_v8  ;;  %v2603_v14 = vpop.f32.mrb[3].mxu1  ;;  %v1583_v8 = vpop.permute.xlu0 %1582 }
 0x134   : > { %v1207_v15 = vadd.f32 %v2601_v9, %v2489_v6  ;;  %v2604_v16 = vadd.f32 %v2603_v14, %v2602_v10  ;;  %v1588_v11 = vpop.permute.xlu1 %1587 }
 0x136   : > { %v1210_v18 = vadd.f32 %v2604_v16, %v2492_v13  ;;  %v1528_v19 = vadd.f32 %v2299_v12, %v1207_v15  ;;  %v2443_v13 = vld [vmem:[%s3365_s13 + $0x18] sm:$0xff]  }
 0x137   : > { %v2493_v21 = vpop.f32.mrb[4].mxu0 }
 0x138   : > { %v1720_v24 = vmul.f32 %v1563_v3, %v1528_v19  ;;  %v2605_v25 = vpop.f32.mrb[4].mxu1  ;;  %v1529_v26 = vadd.f32 %v2300_v17, %v1210_v18  ;;  %v2494_v27 = vpop.f32.mrb[5].mxu0 }
 0x139   : > { %v2495_v28 = vadd.f32 %v2494_v27, %v2493_v21  ;;  %v2606_v29 = vpop.f32.mrb[5].mxu1  ;;  %v2496_v30 = vpop.f32.mrb[6].mxu0 }
 0x13a   : > { %v1752_v31 = vmax.f32 %v1720_v24, 0.0  ;;  %v1721_v32 = vmul.f32 %v1568_v22, %v1529_v26  ;;  %v2607_v33 = vadd.f32 %v2606_v29, %v2605_v25  ;;  %v2608_v35 = vpop.f32.mrb[6].mxu1  ;;  %v2497_v36 = vpop.f32.mrb[7].mxu0  ;;  %v2311_v25 = vunpack.c.l.bf16 %v2443_v13 }
 0x13b   : > { %v2498_v37 = vadd.f32 %v2497_v36, %v2496_v30  ;;  %v2609_v38 = vpop.f32.mrb[7].mxu1  ;;  %v1593_v36 = vpop.permute.xlu0 %1592 }
 0x13c   : > { %v1753_v39 = vmax.f32 %v1721_v32, 0.0  ;;  %v1215_v40 = vadd.f32 %v2607_v33, %v2495_v28  ;;  %v2610_v41 = vadd.f32 %v2609_v38, %v2608_v35  ;;  %v1784_v43 = vmul.f32 %v1752_v31, %v1563_v3 }
 0x13d   : > { %v2312_v33 = vunpack.c.h.bf16 %v2443_v13 }
 0x13e   : > { %v1785_v44 = vmul.f32 %v1753_v39, %v1568_v22  ;;  %v1530_v45 = vadd.f32 %v2303_v34, %v1215_v40  ;;  %v1218_v46 = vadd.f32 %v2610_v41, %v2498_v37  ;;  %v1598_v39 = vpop.permute.xlu1 %1597  ;;  %v2444_v41 = vld [vmem:[%s3365_s13 + $0x20] sm:$0xff]  }
 0x13f   : > { %v2499_v48 = vpop.f32.mrb[8].mxu0 }
 0x140   : > { %v2364_v50 = vpack.c.bf16 %v1785_v44, %v1784_v43  ;;  %v1722_v51 = vmul.f32 %v1573_v20, %v1530_v45  ;;  %v1531_v52 = vadd.f32 %v2304_v42, %v1218_v46  ;;  %v2611_v53 = vpop.f32.mrb[8].mxu1  ;;  %v2500_v54 = vpop.f32.mrb[9].mxu0 }
 0x141   : > { %v2501_v55 = vadd.f32 %v2500_v54, %v2499_v48  ;;  %v2612_v56 = vpop.f32.mrb[9].mxu1  ;;  %v2502_v57 = vpop.f32.mrb[10].mxu0 }
 0x142   : > { %2365 = vst [vmem:[%s3371_s14] sm:$0xff] %v2364_v50   ;;  %v1754_v58 = vmax.f32 %v1722_v51, 0.0  ;;  %v1723_v59 = vmul.f32 %v1578_v47, %v1531_v52  ;;  %v2613_v60 = vadd.f32 %v2612_v56, %v2611_v53  ;;  %v2614_v62 = vpop.f32.mrb[10].mxu1  ;;  %v2503_v63 = vpop.f32.mrb[11].mxu0  ;;  %v2315_v53 = vunpack.c.l.bf16 %v2444_v41 }
 0x143   : > { %v2504_v0 = vadd.f32 %v2503_v63, %v2502_v57  ;;  %v2615_v1 = vpop.f32.mrb[11].mxu1 }
 0x144   : > { %v1755_v2 = vmax.f32 %v1723_v59, 0.0  ;;  %v1223_v3 = vadd.f32 %v2613_v60, %v2501_v55  ;;  %v2616_v4 = vadd.f32 %v2615_v1, %v2614_v62  ;;  %v1786_v6 = vmul.f32 %v1754_v58, %v1573_v20  ;;  %v1603_v62 = vpop.permute.xlu0 %1602 }
 0x146   : > { %v1787_v7 = vmul.f32 %v1755_v2, %v1578_v47  ;;  %v1532_v9 = vadd.f32 %v2307_v61, %v1223_v3  ;;  %v1226_v10 = vadd.f32 %v2616_v4, %v2504_v0  ;;  %v2316_v61 = vunpack.c.h.bf16 %v2444_v41  ;;  %v1608_v3 = vpop.permute.xlu1 %1607 }
 0x147   : > { %v2505_v12 = vpop.f32.mrb[12].mxu0 }
 0x148   : > { %v2369_v14 = vpack.c.bf16 %v1787_v7, %v1786_v6  ;;  %v1724_v15 = vmul.f32 %v1583_v8, %v1532_v9  ;;  %v1533_v16 = vadd.f32 %v2308_v5, %v1226_v10  ;;  %v2617_v17 = vpop.f32.mrb[12].mxu1  ;;  %v2506_v18 = vpop.f32.mrb[13].mxu0  ;;  %v2445_v5 = vld [vmem:[%s3365_s13 + $0x28] sm:$0xff]  }
 0x149   : > { %v2507_v19 = vadd.f32 %v2506_v18, %v2505_v12  ;;  %v2618_v21 = vpop.f32.mrb[13].mxu1  ;;  %v2508_v22 = vpop.f32.mrb[14].mxu0 }
 0x14a   : > { %2456 = vst [vmem:[%s3371_s14 + $0x8] sm:$0xff] %v2369_v14   ;;  %v1756_v23 = vmax.f32 %v1724_v15, 0.0  ;;  %v1725_v24 = vmul.f32 %v1588_v11, %v1533_v16  ;;  %v2619_v20 = vadd.f32 %v2618_v21, %v2617_v17  ;;  %v2620_v26 = vpop.f32.mrb[14].mxu1  ;;  %v2509_v27 = vpop.f32.mrb[15].mxu0  ;;  %v2319_v17 = vunpack.c.l.bf16 %v2445_v5 }
 0x14b   : > { %v2510_v28 = vadd.f32 %v2509_v27, %v2508_v22  ;;  %v2621_v29 = vpop.f32.mrb[15].mxu1 }
 0x14c   : > { %v1757_v30 = vmax.f32 %v1725_v24, 0.0  ;;  %v1231_v31 = vadd.f32 %v2619_v20, %v2507_v19  ;;  %v2622_v32 = vadd.f32 %v2621_v29, %v2620_v26  ;;  %v1788_v34 = vmul.f32 %v1756_v23, %v1583_v8  ;;  %v1613_v26 = vpop.permute.xlu0 %1612 }
 0x14e   : > { %v1789_v35 = vmul.f32 %v1757_v30, %v1588_v11  ;;  %v1534_v37 = vadd.f32 %v2311_v25, %v1231_v31  ;;  %v1234_v38 = vadd.f32 %v2622_v32, %v2510_v28  ;;  %v2320_v25 = vunpack.c.h.bf16 %v2445_v5  ;;  %v1618_v31 = vpop.permute.xlu1 %1617 }
 0x14f   : > { %v2511_v40 = vpop.f32.mrb[16].mxu0 }
 0x150   : > { %v2374_v42 = vpack.c.bf16 %v1789_v35, %v1788_v34  ;;  %v1726_v43 = vmul.f32 %v1593_v36, %v1534_v37  ;;  %v1535_v44 = vadd.f32 %v2312_v33, %v1234_v38  ;;  %v2623_v45 = vpop.f32.mrb[16].mxu1  ;;  %v2512_v46 = vpop.f32.mrb[17].mxu0  ;;  %v2446_v33 = vld [vmem:[%s3365_s13 + $0x30] sm:$0xff]  }
 0x151   : > { %v2513_v47 = vadd.f32 %v2512_v46, %v2511_v40  ;;  %v2624_v48 = vpop.f32.mrb[17].mxu1  ;;  %v2514_v49 = vpop.f32.mrb[18].mxu0 }
 0x152   : > { %2457 = vst [vmem:[%s3371_s14 + $0x10] sm:$0xff] %v2374_v42   ;;  %v1758_v50 = vmax.f32 %v1726_v43, 0.0  ;;  %v1727_v51 = vmul.f32 %v1598_v39, %v1535_v44  ;;  %v2625_v52 = vadd.f32 %v2624_v48, %v2623_v45  ;;  %v2626_v54 = vpop.f32.mrb[18].mxu1  ;;  %v2515_v55 = vpop.f32.mrb[19].mxu0  ;;  %v2323_v45 = vunpack.c.l.bf16 %v2446_v33 }
 0x153   : > { %v2516_v56 = vadd.f32 %v2515_v55, %v2514_v49  ;;  %v2627_v57 = vpop.f32.mrb[19].mxu1 }
 0x154   : > { %v1759_v58 = vmax.f32 %v1727_v51, 0.0  ;;  %v1239_v59 = vadd.f32 %v2625_v52, %v2513_v47  ;;  %v2628_v60 = vadd.f32 %v2627_v57, %v2626_v54  ;;  %v1790_v63 = vmul.f32 %v1758_v50, %v1593_v36  ;;  %v1623_v54 = vpop.permute.xlu0 %1622 }
 0x156   : > { %v1791_v0 = vmul.f32 %v1759_v58, %v1598_v39  ;;  %v1536_v1 = vadd.f32 %v2315_v53, %v1239_v59  ;;  %v1242_v2 = vadd.f32 %v2628_v60, %v2516_v56  ;;  %v2324_v53 = vunpack.c.h.bf16 %v2446_v33  ;;  %v1628_v59 = vpop.permute.xlu1 %1627 }
 0x157   : > { %v2517_v4 = vpop.f32.mrb[20].mxu0 }
 0x158   : > { %v2379_v6 = vpack.c.bf16 %v1791_v0, %v1790_v63  ;;  %v1728_v7 = vmul.f32 %v1603_v62, %v1536_v1  ;;  %v1537_v8 = vadd.f32 %v2316_v61, %v1242_v2  ;;  %v2629_v9 = vpop.f32.mrb[20].mxu1  ;;  %v2518_v10 = vpop.f32.mrb[21].mxu0  ;;  %v2447_v61 = vld [vmem:[%s3365_s13 + $0x38] sm:$0xff]  }
 0x159   : > { %v2519_v11 = vadd.f32 %v2518_v10, %v2517_v4  ;;  %v2630_v12 = vpop.f32.mrb[21].mxu1  ;;  %v2520_v13 = vpop.f32.mrb[22].mxu0 }
 0x15a   : > { %2458 = vst [vmem:[%s3371_s14 + $0x18] sm:$0xff] %v2379_v6   ;;  %v1760_v14 = vmax.f32 %v1728_v7, 0.0  ;;  %v1729_v15 = vmul.f32 %v1608_v3, %v1537_v8  ;;  %v2631_v16 = vadd.f32 %v2630_v12, %v2629_v9  ;;  %v2632_v18 = vpop.f32.mrb[22].mxu1  ;;  %v2521_v19 = vpop.f32.mrb[23].mxu0  ;;  %v2327_v9 = vunpack.c.l.bf16 %v2447_v61 }
 0x15b   : > { %v2522_v21 = vadd.f32 %v2521_v19, %v2520_v13  ;;  %v2633_v22 = vpop.f32.mrb[23].mxu1 }
 0x15c   : > { %v1761_v23 = vmax.f32 %v1729_v15, 0.0  ;;  %v1247_v24 = vadd.f32 %v2631_v16, %v2519_v11  ;;  %v2634_v20 = vadd.f32 %v2633_v22, %v2632_v18  ;;  %v1792_v27 = vmul.f32 %v1760_v14, %v1603_v62  ;;  %v1633_v18 = vpop.permute.xlu0 %1632 }
 0x15e   : > { %v1793_v28 = vmul.f32 %v1761_v23, %v1608_v3  ;;  %v1538_v29 = vadd.f32 %v2319_v17, %v1247_v24  ;;  %v1250_v30 = vadd.f32 %v2634_v20, %v2522_v21  ;;  %v2328_v17 = vunpack.c.h.bf16 %v2447_v61  ;;  %v1638_v24 = vpop.permute.xlu1 %1637 }
 0x15f   : > { %v2523_v32 = vpop.f32.mrb[24].mxu0 }
 0x160   : > { %v2384_v34 = vpack.c.bf16 %v1793_v28, %v1792_v27  ;;  %v1730_v35 = vmul.f32 %v1613_v26, %v1538_v29  ;;  %v1539_v36 = vadd.f32 %v2320_v25, %v1250_v30  ;;  %v2635_v37 = vpop.f32.mrb[24].mxu1  ;;  %v2524_v38 = vpop.f32.mrb[25].mxu0  ;;  %v2448_v25 = vld [vmem:[%s3365_s13 + $0x40] sm:$0xff]  }
 0x161   : > { %v2525_v39 = vadd.f32 %v2524_v38, %v2523_v32  ;;  %v2636_v40 = vpop.f32.mrb[25].mxu1  ;;  %v2526_v41 = vpop.f32.mrb[26].mxu0 }
 0x162   : > { %2459 = vst [vmem:[%s3371_s14 + $0x20] sm:$0xff] %v2384_v34   ;;  %v1762_v42 = vmax.f32 %v1730_v35, 0.0  ;;  %v1731_v43 = vmul.f32 %v1618_v31, %v1539_v36  ;;  %v2637_v44 = vadd.f32 %v2636_v40, %v2635_v37  ;;  %v2638_v46 = vpop.f32.mrb[26].mxu1  ;;  %v2527_v47 = vpop.f32.mrb[27].mxu0  ;;  %v2331_v37 = vunpack.c.l.bf16 %v2448_v25 }
 0x163   : > { %v2528_v48 = vadd.f32 %v2527_v47, %v2526_v41  ;;  %v2639_v49 = vpop.f32.mrb[27].mxu1 }
 0x164   : > { %v1763_v50 = vmax.f32 %v1731_v43, 0.0  ;;  %v1255_v51 = vadd.f32 %v2637_v44, %v2525_v39  ;;  %v2640_v52 = vadd.f32 %v2639_v49, %v2638_v46  ;;  %v1794_v55 = vmul.f32 %v1762_v42, %v1613_v26  ;;  %v1643_v46 = vpop.permute.xlu0 %1642 }
 0x166   : > { %v1795_v56 = vmul.f32 %v1763_v50, %v1618_v31  ;;  %v1540_v57 = vadd.f32 %v2323_v45, %v1255_v51  ;;  %v1258_v58 = vadd.f32 %v2640_v52, %v2528_v48  ;;  %v2332_v45 = vunpack.c.h.bf16 %v2448_v25  ;;  %v1648_v51 = vpop.permute.xlu1 %1647 }
 0x167   : > { %v2529_v60 = vpop.f32.mrb[28].mxu0 }
 0x168   : > { %v2389_v62 = vpack.c.bf16 %v1795_v56, %v1794_v55  ;;  %v1732_v63 = vmul.f32 %v1623_v54, %v1540_v57  ;;  %v1541_v0 = vadd.f32 %v2324_v53, %v1258_v58  ;;  %v2641_v1 = vpop.f32.mrb[28].mxu1  ;;  %v2530_v2 = vpop.f32.mrb[29].mxu0  ;;  %v2449_v53 = vld [vmem:[%s3365_s13 + $0x48] sm:$0xff]  }
 0x169   : > { %v2531_v3 = vadd.f32 %v2530_v2, %v2529_v60  ;;  %v2642_v4 = vpop.f32.mrb[29].mxu1  ;;  %v2532_v5 = vpop.f32.mrb[30].mxu0 }
 0x16a   : > { %2460 = vst [vmem:[%s3371_s14 + $0x28] sm:$0xff] %v2389_v62   ;;  %v1764_v6 = vmax.f32 %v1732_v63, 0.0  ;;  %v1733_v7 = vmul.f32 %v1628_v59, %v1541_v0  ;;  %v2643_v8 = vadd.f32 %v2642_v4, %v2641_v1  ;;  %v2644_v10 = vpop.f32.mrb[30].mxu1  ;;  %v2533_v11 = vpop.f32.mrb[31].mxu0  ;;  %v2335_v1 = vunpack.c.l.bf16 %v2449_v53 }
 0x16b   : > { %v2534_v12 = vadd.f32 %v2533_v11, %v2532_v5  ;;  %v2645_v13 = vpop.f32.mrb[31].mxu1 }
 0x16c   : > { %v1765_v14 = vmax.f32 %v1733_v7, 0.0  ;;  %v1263_v15 = vadd.f32 %v2643_v8, %v2531_v3  ;;  %v2646_v16 = vadd.f32 %v2645_v13, %v2644_v10  ;;  %v1796_v19 = vmul.f32 %v1764_v6, %v1623_v54  ;;  %v1653_v10 = vpop.permute.xlu0 %1652 }
 0x16e   : > { %v1797_v21 = vmul.f32 %v1765_v14, %v1628_v59  ;;  %v1542_v22 = vadd.f32 %v2327_v9, %v1263_v15  ;;  %v1266_v23 = vadd.f32 %v2646_v16, %v2534_v12  ;;  %v2336_v9 = vunpack.c.h.bf16 %v2449_v53  ;;  %v1658_v15 = vpop.permute.xlu1 %1657 }
 0x16f   : > { %v2535_v20 = vpop.f32.mrb[32].mxu0 }
 0x170   : > { %v2394_v26 = vpack.c.bf16 %v1797_v21, %v1796_v19  ;;  %v1734_v27 = vmul.f32 %v1633_v18, %v1542_v22  ;;  %v1543_v28 = vadd.f32 %v2328_v17, %v1266_v23  ;;  %v2647_v29 = vpop.f32.mrb[32].mxu1  ;;  %v2536_v30 = vpop.f32.mrb[33].mxu0  ;;  %v2450_v17 = vld [vmem:[%s3365_s13 + $0x50] sm:$0xff]  }
 0x171   : > { %v2537_v31 = vadd.f32 %v2536_v30, %v2535_v20  ;;  %v2648_v32 = vpop.f32.mrb[33].mxu1  ;;  %v2538_v33 = vpop.f32.mrb[34].mxu0 }
 0x172   : > { %2461 = vst [vmem:[%s3371_s14 + $0x30] sm:$0xff] %v2394_v26   ;;  %v1766_v34 = vmax.f32 %v1734_v27, 0.0  ;;  %v1735_v35 = vmul.f32 %v1638_v24, %v1543_v28  ;;  %v2649_v36 = vadd.f32 %v2648_v32, %v2647_v29  ;;  %v2650_v38 = vpop.f32.mrb[34].mxu1  ;;  %v2539_v39 = vpop.f32.mrb[35].mxu0  ;;  %v2339_v29 = vunpack.c.l.bf16 %v2450_v17 }
 0x173   : > { %v2540_v40 = vadd.f32 %v2539_v39, %v2538_v33  ;;  %v2651_v41 = vpop.f32.mrb[35].mxu1 }
 0x174   : > { %v1767_v42 = vmax.f32 %v1735_v35, 0.0  ;;  %v1271_v43 = vadd.f32 %v2649_v36, %v2537_v31  ;;  %v2652_v44 = vadd.f32 %v2651_v41, %v2650_v38  ;;  %v1798_v47 = vmul.f32 %v1766_v34, %v1633_v18  ;;  %v1663_v38 = vpop.permute.xlu0 %1662 }
 0x176   : > { %v1799_v48 = vmul.f32 %v1767_v42, %v1638_v24  ;;  %v1544_v49 = vadd.f32 %v2331_v37, %v1271_v43  ;;  %v1274_v50 = vadd.f32 %v2652_v44, %v2540_v40  ;;  %v2340_v37 = vunpack.c.h.bf16 %v2450_v17  ;;  %v1668_v43 = vpop.permute.xlu1 %1667 }
 0x177   : > { %v2541_v52 = vpop.f32.mrb[36].mxu0 }
 0x178   : > { %v2399_v54 = vpack.c.bf16 %v1799_v48, %v1798_v47  ;;  %v1736_v55 = vmul.f32 %v1643_v46, %v1544_v49  ;;  %v1545_v56 = vadd.f32 %v2332_v45, %v1274_v50  ;;  %v2653_v57 = vpop.f32.mrb[36].mxu1  ;;  %v2542_v58 = vpop.f32.mrb[37].mxu0  ;;  %v2451_v45 = vld [vmem:[%s3365_s13 + $0x58] sm:$0xff]  }
 0x179   : > { %v2543_v59 = vadd.f32 %v2542_v58, %v2541_v52  ;;  %v2654_v60 = vpop.f32.mrb[37].mxu1  ;;  %v2544_v61 = vpop.f32.mrb[38].mxu0 }
 0x17a   : > { %2462 = vst [vmem:[%s3371_s14 + $0x38] sm:$0xff] %v2399_v54   ;;  %v1768_v62 = vmax.f32 %v1736_v55, 0.0  ;;  %v1737_v63 = vmul.f32 %v1648_v51, %v1545_v56  ;;  %v2655_v0 = vadd.f32 %v2654_v60, %v2653_v57  ;;  %v2656_v2 = vpop.f32.mrb[38].mxu1  ;;  %v2545_v3 = vpop.f32.mrb[39].mxu0  ;;  %v2343_v57 = vunpack.c.l.bf16 %v2451_v45 }
 0x17b   : > { %v2546_v4 = vadd.f32 %v2545_v3, %v2544_v61  ;;  %v2657_v5 = vpop.f32.mrb[39].mxu1 }
 0x17c   : > { %v1769_v6 = vmax.f32 %v1737_v63, 0.0  ;;  %v1279_v7 = vadd.f32 %v2655_v0, %v2543_v59  ;;  %v2658_v8 = vadd.f32 %v2657_v5, %v2656_v2  ;;  %v1800_v11 = vmul.f32 %v1768_v62, %v1643_v46  ;;  %v1673_v2 = vpop.permute.xlu0 %1672 }
 0x17e   : > { %v1801_v12 = vmul.f32 %v1769_v6, %v1648_v51  ;;  %v1546_v13 = vadd.f32 %v2335_v1, %v1279_v7  ;;  %v1282_v14 = vadd.f32 %v2658_v8, %v2546_v4  ;;  %v2344_v1 = vunpack.c.h.bf16 %v2451_v45  ;;  %v1678_v7 = vpop.permute.xlu1 %1677 }
 0x17f   : > { %v2547_v16 = vpop.f32.mrb[40].mxu0 }
 0x180   : > { %v2404_v18 = vpack.c.bf16 %v1801_v12, %v1800_v11  ;;  %v1738_v19 = vmul.f32 %v1653_v10, %v1546_v13  ;;  %v1547_v21 = vadd.f32 %v2336_v9, %v1282_v14  ;;  %v2659_v22 = vpop.f32.mrb[40].mxu1  ;;  %v2548_v23 = vpop.f32.mrb[41].mxu0  ;;  %v2452_v9 = vld [vmem:[%s3365_s13 + $0x60] sm:$0xff]  }
 0x181   : > { %v2549_v24 = vadd.f32 %v2548_v23, %v2547_v16  ;;  %v2660_v20 = vpop.f32.mrb[41].mxu1  ;;  %v2550_v25 = vpop.f32.mrb[42].mxu0 }
 0x182   : > { %2463 = vst [vmem:[%s3371_s14 + $0x40] sm:$0xff] %v2404_v18   ;;  %v1770_v26 = vmax.f32 %v1738_v19, 0.0  ;;  %v1739_v27 = vmul.f32 %v1658_v15, %v1547_v21  ;;  %v2661_v28 = vadd.f32 %v2660_v20, %v2659_v22  ;;  %v2662_v30 = vpop.f32.mrb[42].mxu1  ;;  %v2551_v31 = vpop.f32.mrb[43].mxu0  ;;  %v2347_v22 = vunpack.c.l.bf16 %v2452_v9 }
 0x183   : > { %v2552_v32 = vadd.f32 %v2551_v31, %v2550_v25  ;;  %v2663_v33 = vpop.f32.mrb[43].mxu1 }
 0x184   : > { %v1771_v34 = vmax.f32 %v1739_v27, 0.0  ;;  %v1287_v35 = vadd.f32 %v2661_v28, %v2549_v24  ;;  %v2664_v36 = vadd.f32 %v2663_v33, %v2662_v30  ;;  %v1802_v39 = vmul.f32 %v1770_v26, %v1653_v10  ;;  %v1683_v30 = vpop.permute.xlu0 %1682 }
 0x186   : > { %v1803_v40 = vmul.f32 %v1771_v34, %v1658_v15  ;;  %v1548_v41 = vadd.f32 %v2339_v29, %v1287_v35  ;;  %v1290_v42 = vadd.f32 %v2664_v36, %v2552_v32  ;;  %v2348_v29 = vunpack.c.h.bf16 %v2452_v9  ;;  %v1688_v35 = vpop.permute.xlu1 %1687 }
 0x187   : > { %v2553_v44 = vpop.f32.mrb[44].mxu0 }
 0x188   : > { %v2409_v46 = vpack.c.bf16 %v1803_v40, %v1802_v39  ;;  %v1740_v47 = vmul.f32 %v1663_v38, %v1548_v41  ;;  %v1549_v48 = vadd.f32 %v2340_v37, %v1290_v42  ;;  %v2665_v49 = vpop.f32.mrb[44].mxu1  ;;  %v2554_v50 = vpop.f32.mrb[45].mxu0  ;;  %v2453_v37 = vld [vmem:[%s3365_s13 + $0x68] sm:$0xff]  }
 0x189   : > { %v2555_v51 = vadd.f32 %v2554_v50, %v2553_v44  ;;  %v2666_v52 = vpop.f32.mrb[45].mxu1  ;;  %v2556_v53 = vpop.f32.mrb[46].mxu0 }
 0x18a   : > { %2464 = vst [vmem:[%s3371_s14 + $0x48] sm:$0xff] %v2409_v46   ;;  %v1772_v54 = vmax.f32 %v1740_v47, 0.0  ;;  %v1741_v55 = vmul.f32 %v1668_v43, %v1549_v48  ;;  %v2667_v56 = vadd.f32 %v2666_v52, %v2665_v49  ;;  %v2668_v58 = vpop.f32.mrb[46].mxu1  ;;  %v2557_v59 = vpop.f32.mrb[47].mxu0  ;;  %v2351_v49 = vunpack.c.l.bf16 %v2453_v37 }
 0x18b   : > { %v2558_v60 = vadd.f32 %v2557_v59, %v2556_v53  ;;  %v2669_v61 = vpop.f32.mrb[47].mxu1 }
 0x18c   : > { %v1773_v62 = vmax.f32 %v1741_v55, 0.0  ;;  %v1295_v63 = vadd.f32 %v2667_v56, %v2555_v51  ;;  %v2670_v0 = vadd.f32 %v2669_v61, %v2668_v58  ;;  %v1804_v3 = vmul.f32 %v1772_v54, %v1663_v38  ;;  %v1693_v58 = vpop.permute.xlu0 %1692 }
 0x18e   : > { %v1805_v4 = vmul.f32 %v1773_v62, %v1668_v43  ;;  %v1550_v5 = vadd.f32 %v2343_v57, %v1295_v63  ;;  %v1298_v6 = vadd.f32 %v2670_v0, %v2558_v60  ;;  %v2352_v57 = vunpack.c.h.bf16 %v2453_v37  ;;  %v1698_v63 = vpop.permute.xlu1 %1697 }
 0x18f   : > { %v2559_v8 = vpop.f32.mrb[48].mxu0 }
 0x190   : > { %v2414_v10 = vpack.c.bf16 %v1805_v4, %v1804_v3  ;;  %v1742_v11 = vmul.f32 %v1673_v2, %v1550_v5  ;;  %v1551_v12 = vadd.f32 %v2344_v1, %v1298_v6  ;;  %v2671_v13 = vpop.f32.mrb[48].mxu1  ;;  %v2560_v14 = vpop.f32.mrb[49].mxu0  ;;  %v2454_v1 = vld [vmem:[%s3365_s13 + $0x70] sm:$0xff]  }
 0x191   : > { %v2561_v15 = vadd.f32 %v2560_v14, %v2559_v8  ;;  %v2672_v16 = vpop.f32.mrb[49].mxu1  ;;  %v2562_v17 = vpop.f32.mrb[50].mxu0 }
 0x192   : > { %2465 = vst [vmem:[%s3371_s14 + $0x50] sm:$0xff] %v2414_v10   ;;  %v1774_v18 = vmax.f32 %v1742_v11, 0.0  ;;  %v1743_v19 = vmul.f32 %v1678_v7, %v1551_v12  ;;  %v2673_v21 = vadd.f32 %v2672_v16, %v2671_v13  ;;  %v2674_v23 = vpop.f32.mrb[50].mxu1  ;;  %v2563_v24 = vpop.f32.mrb[51].mxu0  ;;  %v2355_v13 = vunpack.c.l.bf16 %v2454_v1 }
 0x193   : > { %v2564_v20 = vadd.f32 %v2563_v24, %v2562_v17  ;;  %v2675_v25 = vpop.f32.mrb[51].mxu1 }
 0x194   : > { %v1775_v26 = vmax.f32 %v1743_v19, 0.0  ;;  %v1303_v27 = vadd.f32 %v2673_v21, %v2561_v15  ;;  %v2676_v28 = vadd.f32 %v2675_v25, %v2674_v23  ;;  %v1806_v31 = vmul.f32 %v1774_v18, %v1673_v2  ;;  %v1708_v23 = vpop.permute.xlu1 %1707 }
 0x196   : > { %v1807_v32 = vmul.f32 %v1775_v26, %v1678_v7  ;;  %v1552_v33 = vadd.f32 %v2347_v22, %v1303_v27  ;;  %v1306_v34 = vadd.f32 %v2676_v28, %v2564_v20  ;;  %v2356_v22 = vunpack.c.h.bf16 %v2454_v1  ;;  %v1703_v27 = vpop.permute.xlu0 %1702 }
 0x197   : > { %v2565_v36 = vpop.f32.mrb[52].mxu0 }
 0x198   : > { %v2419_v38 = vpack.c.bf16 %v1807_v32, %v1806_v31  ;;  %v1744_v39 = vmul.f32 %v1683_v30, %v1552_v33  ;;  %v1553_v40 = vadd.f32 %v2348_v29, %v1306_v34  ;;  %v2677_v41 = vpop.f32.mrb[52].mxu1  ;;  %v2566_v42 = vpop.f32.mrb[53].mxu0  ;;  %v2455_v29 = vld [vmem:[%s3365_s13 + $0x78] sm:$0xff]  }
 0x199   : > { %v2567_v43 = vadd.f32 %v2566_v42, %v2565_v36  ;;  %v2678_v44 = vpop.f32.mrb[53].mxu1  ;;  %v2568_v45 = vpop.f32.mrb[54].mxu0 }
 0x19a   : > { %2466 = vst [vmem:[%s3371_s14 + $0x58] sm:$0xff] %v2419_v38   ;;  %v1776_v46 = vmax.f32 %v1744_v39, 0.0  ;;  %v1745_v47 = vmul.f32 %v1688_v35, %v1553_v40  ;;  %v2679_v48 = vadd.f32 %v2678_v44, %v2677_v41  ;;  %v2680_v50 = vpop.f32.mrb[54].mxu1  ;;  %v2569_v51 = vpop.f32.mrb[55].mxu0  ;;  %v2359_v41 = vunpack.c.l.bf16 %v2455_v29 }
 0x19b   : > { %v2570_v52 = vadd.f32 %v2569_v51, %v2568_v45  ;;  %v2681_v53 = vpop.f32.mrb[55].mxu1 }
 0x19c   : > { %v1777_v54 = vmax.f32 %v1745_v47, 0.0  ;;  %v1311_v55 = vadd.f32 %v2679_v48, %v2567_v43  ;;  %v2682_v56 = vadd.f32 %v2681_v53, %v2680_v50  ;;  %v1808_v59 = vmul.f32 %v1776_v46, %v1683_v30 }
 0x19e   : > { %v1809_v60 = vmul.f32 %v1777_v54, %v1688_v35  ;;  %v1554_v61 = vadd.f32 %v2351_v49, %v1311_v55  ;;  %v1314_v62 = vadd.f32 %v2682_v56, %v2570_v52  ;;  %v2360_v49 = vunpack.c.h.bf16 %v2455_v29  ;;  %v1713_v54 = vpop.permute.xlu0 %1712 }
 0x19f   : > { %v2571_v0 = vpop.f32.mrb[56].mxu0 }
 0x1a0   : > { %v2424_v2 = vpack.c.bf16 %v1809_v60, %v1808_v59  ;;  %v1746_v3 = vmul.f32 %v1693_v58, %v1554_v61  ;;  %v1555_v4 = vadd.f32 %v2352_v57, %v1314_v62  ;;  %v2683_v5 = vpop.f32.mrb[56].mxu1  ;;  %v2572_v6 = vpop.f32.mrb[57].mxu0 }
 0x1a1   : > { %v2573_v7 = vadd.f32 %v2572_v6, %v2571_v0  ;;  %v2684_v8 = vpop.f32.mrb[57].mxu1  ;;  %v2574_v9 = vpop.f32.mrb[58].mxu0 }
 0x1a2   : > { %2467 = vst [vmem:[%s3371_s14 + $0x60] sm:$0xff] %v2424_v2   ;;  %v1778_v10 = vmax.f32 %v1746_v3, 0.0  ;;  %v1747_v11 = vmul.f32 %v1698_v63, %v1555_v4  ;;  %v2685_v12 = vadd.f32 %v2684_v8, %v2683_v5  ;;  %v2686_v14 = vpop.f32.mrb[58].mxu1  ;;  %v2575_v15 = vpop.f32.mrb[59].mxu0 }
 0x1a3   : > { %v2576_v16 = vadd.f32 %v2575_v15, %v2574_v9  ;;  %v2687_v17 = vpop.f32.mrb[59].mxu1 }
 0x1a4   : > { %v1779_v18 = vmax.f32 %v1747_v11, 0.0  ;;  %v1319_v19 = vadd.f32 %v2685_v12, %v2573_v7  ;;  %v2688_v21 = vadd.f32 %v2687_v17, %v2686_v14  ;;  %v1810_v24 = vmul.f32 %v1778_v10, %v1693_v58  ;;  %v1718_v58 = vpop.permute.xlu1 %1717 }
 0x1a6   : > { %v1811_v20 = vmul.f32 %v1779_v18, %v1698_v63  ;;  %v1556_v25 = vadd.f32 %v2355_v13, %v1319_v19  ;;  %v1322_v26 = vadd.f32 %v2688_v21, %v2576_v16 }
 0x1a7   : > { %v2577_v28 = vpop.f32.mrb[60].mxu0 }
 0x1a8   : > { %v2429_v30 = vpack.c.bf16 %v1811_v20, %v1810_v24  ;;  %v1748_v31 = vmul.f32 %v1703_v27, %v1556_v25  ;;  %v1557_v32 = vadd.f32 %v2356_v22, %v1322_v26  ;;  %v2689_v33 = vpop.f32.mrb[60].mxu1  ;;  %v2578_v34 = vpop.f32.mrb[61].mxu0 }
 0x1a9   : > { %v2579_v35 = vadd.f32 %v2578_v34, %v2577_v28  ;;  %v2690_v36 = vpop.f32.mrb[61].mxu1  ;;  %v2580_v37 = vpop.f32.mrb[62].mxu0 }
 0x1aa   : > { %2468 = vst [vmem:[%s3371_s14 + $0x68] sm:$0xff] %v2429_v30   ;;  %v1780_v38 = vmax.f32 %v1748_v31, 0.0  ;;  %v1749_v39 = vmul.f32 %v1708_v23, %v1557_v32  ;;  %v2691_v40 = vadd.f32 %v2690_v36, %v2689_v33  ;;  %v2692_v42 = vpop.f32.mrb[62].mxu1  ;;  %v2581_v43 = vpop.f32.mrb[63].mxu0 }
 0x1ab   : > { %v2582_v44 = vadd.f32 %v2581_v43, %v2580_v37  ;;  %v2693_v45 = vpop.f32.mrb[63].mxu1 }
 0x1ac   : > { %v1781_v46 = vmax.f32 %v1749_v39, 0.0  ;;  %v1327_v47 = vadd.f32 %v2691_v40, %v2579_v35  ;;  %v2694_v48 = vadd.f32 %v2693_v45, %v2692_v42  ;;  %v1812_v50 = vmul.f32 %v1780_v38, %v1703_v27 }
 0x1ae   : > { %v1813_v51 = vmul.f32 %v1781_v46, %v1708_v23  ;;  %v1558_v52 = vadd.f32 %v2359_v41, %v1327_v47  ;;  %v1330_v53 = vadd.f32 %v2694_v48, %v2582_v44 }
 0x1b0   : > { %v2434_v55 = vpack.c.bf16 %v1813_v51, %v1812_v50  ;;  %v1750_v56 = vmul.f32 %v1713_v54, %v1558_v52  ;;  %v1559_v57 = vadd.f32 %v2360_v49, %v1330_v53 }
 0x1b2   : > { %2469 = vst [vmem:[%s3371_s14 + $0x70] sm:$0xff] %v2434_v55   ;;  %v1782_v59 = vmax.f32 %v1750_v56, 0.0  ;;  %v1751_v60 = vmul.f32 %v1718_v58, %v1559_v57 }
 0x1b4   : > { %v1783_v61 = vmax.f32 %v1751_v60, 0.0  ;;  %v1814_v62 = vmul.f32 %v1782_v59, %v1713_v54 }
 0x1b6   : > { %v1815_v63 = vmul.f32 %v1783_v61, %v1718_v58 }
 0x1b8   : > { %v2439_v0 = vpack.c.bf16 %v1815_v63, %v1814_v62 }
 0x1ba   : > { %2470 = vst [vmem:[%s3371_s14 + $0x78] sm:$0xff] %v2439_v0  }
 0x1bb   : > { %2935 = shalt.err (!%p2932_p4)
}
 0x1bc   : > { %s2936_s25 = scalar_lea.hbm %s3406_s8, 2048  ;;  %s2940_s13 = scalar_lea.hbm %s3462_s4, 4096 }
 0x1bd   : > { %p2937_p7 = scmp.ne.s32.totalorder %s3406_s8, %s2936_s25  ;;  %p2941_p1 = scmp.lt.u32.totalorder %s3406_s8, %s3462_s4 }
 0x1be   : > { %p2942_p3 = scmp.lt.u32.totalorder %s2940_s13, %s2936_s25  ;;  %p2944_p9 = scmp.lt.u32.totalorder %s2936_s25, %s3406_s8 }
 0x1bf   : > { %p2938_p10 = pnand %p2937_p7, %p3470_p11 }
 0x1c0   : > { %p2943_p8 = por %p2942_p3, %p2941_p1 }
 0x1c1   : > { %p2939_p12 = pneg %p2938_p10 }
 0x1c2   : > { %p2945_p0 = por %p2944_p9, %p2943_p8 }
 0x1c4   : > { %p2946_p6 = pnand %p2945_p0, %p2939_p12 }
 0x1c6   : > { %2949 = shalt.err (!%p2946_p6)
}
 0x1c7   : > { %s3011_s6 = smov 64   ;;  %s3012_s7 = smov 4  }
 0x1c8   : > { %2697 = dma.vmem_to_hbm [thread:$0]  (%p3470_p11), %s3408_s5, 2048, %s3406_s8, %s1977_s9, %s3011_s6, %s3011_s6, %s3012_s7  }
 0x1c9 PF: > { %s2005_s27 = sand.u32 1, %s2984_s15   ;;  %p3471_p13 = scmp.ne.s32.totalorder %s3467_s30, 0 }
 0x1ca   : > { %p3472_p2 = scmp.ge.s32.totalorder %s3004_s20, 2  ;;  %s2006_s11 = scalar_lea.sflag [#allocation5], %s2005_s27 }
 0x1cc   : > { %p2704_p5 = pnand %p3472_p2, %p3471_p13 }
 0x1ce   : > { %2979 = dma.done.wait (!%p2704_p5), %s2006_s11, 2048  }
 0x1cf   : > { %2981 = vsyncadd (!%p2704_p5), %s2006_s11, 4294965248  ;;  %s20_s20 = sadd.s32 1, %s3004_s20   ;;  %s3473_s15 = smov %s2988_s16 }
 0x1d0   : > { %p17_p4 = scmp.ge.s32.totalorder %s20_s20, 4   ;;  %s3474_s16 = smov %s2992_s17 }
 0x1d1   : > { %s3475_s17 = smov %s3094_s29  ;;  %s3476_s18 = smov %s3000_s19 }
 0x1d2   : > { %s3477_s19 = smov %s3479_s23  ;;  %19 = sbr.rel (!%p17_p4) target bundleno = 6 (0x6), region = 98 }
 0x1d9   :  { %2011 = vsyncpa [#allocation4], 1 }
 0x1da   :  { %2013 = vsyncpa [#allocation4 + $0x1], 1 }
 0x1db   :  { %2014 = vsyncpa [#allocation5], 1 }
 0x1dc   :  { %2016 = vsyncpa [#allocation5 + $0x1], 1 }

</bundles_post_ra>
